<compile_context>
chip_gen: v7x
topology: tpu7x:2x2x1
jax: 0.10.0
libtpu: 0.0.40
codegen_flags: <defaults>
</compile_context>

<pallas_src>
import functools

import jax
import jax.numpy as jnp
from jax.experimental import pallas as pl
from jax.experimental.pallas import tpu as pltpu

LEAKY_SLOPE = 0.2
BN_EPS = 1e-5


# ----------------------------------------------------------------------------
# Pallas kernels
# ----------------------------------------------------------------------------
def _conv_mm_kernel(p_ref, w_ref, o_ref, stats_ref, acc_ref, *, alpha):
    """Tiled  out = patches @ w  with f32 accumulator.

    Finalize phase also writes per-channel partial (sum, sum_of_squares) of the
    *pre-activation* tile so BatchNorm statistics come for free (no extra HBM
    read of the activation).  If `alpha` is not None, LeakyReLU(alpha) is fused
    into the store.
    """
    k = pl.program_id(2)

    @pl.when(k == 0)
    def _():
        acc_ref[...] = jnp.zeros_like(acc_ref)

    acc_ref[...] += jnp.dot(p_ref[...], w_ref[...],
                            preferred_element_type=jnp.float32)

    @pl.when(k == pl.num_programs(2) - 1)
    def _():
        acc = acc_ref[...]
        # Partial BN stats for this (row-tile, channel-tile).  Padded rows are
        # exactly zero (zero-padded patches), so they contribute nothing.
        s = jnp.sum(acc, axis=0, keepdims=True)            # (1, tn)
        ss = jnp.sum(acc * acc, axis=0, keepdims=True)     # (1, tn)
        stats_ref[...] = jnp.concatenate([s, ss], axis=0)[None, :, :]
        if alpha is not None:
            acc = jnp.where(acc >= 0.0, acc, alpha * acc)
        o_ref[...] = acc.astype(o_ref.dtype)


def conv_matmul(patches, wmat, *, alpha, tm, tn, tk):
    """patches: (Mp, Kp) bf16, wmat: (Kp, Np) bf16 -> (y (Mp,Np) f32, stats)."""
    M, K = patches.shape
    K2, N = wmat.shape
    assert K == K2 and M % tm == 0 and N % tn == 0 and K % tk == 0
    gm, gn, gk = M // tm, N // tn, K // tk
    y, stats = pl.pallas_call(
        functools.partial(_conv_mm_kernel, alpha=alpha),
        out_shape=(jax.ShapeDtypeStruct((M, N), jnp.float32),
                   jax.ShapeDtypeStruct((gm, 2, N), jnp.float32)),
        grid=(gm, gn, gk),
        in_specs=[
            pl.BlockSpec((tm, tk), lambda i, j, k: (i, k)),
            pl.BlockSpec((tk, tn), lambda i, j, k: (k, j)),
        ],
        out_specs=(
            pl.BlockSpec((tm, tn), lambda i, j, k: (i, j)),
            pl.BlockSpec((1, 2, tn), lambda i, j, k: (i, 0, j)),
        ),
        scratch_shapes=[pltpu.VMEM((tm, tn), jnp.float32)],
        compiler_params=pltpu.CompilerParams(
            dimension_semantics=("parallel", "parallel", "arbitrary")),
    )(patches, wmat)
    return y, stats


def _bn_act_kernel(y_ref, sc_ref, sh_ref, o_ref, *, alpha):
    """Elementwise  out = LeakyReLU(y * scale + shift)  (scale/shift per-channel)."""
    y = y_ref[...] * sc_ref[...] + sh_ref[...]
    if alpha is not None:
        y = jnp.where(y >= 0.0, y, alpha * y)
    o_ref[...] = y.astype(o_ref.dtype)


def bn_apply(y, scale, shift, *, alpha, tm, tn):
    """y: (Mp, Np) f32, scale/shift: (1, Np) f32 -> (Mp, Np) f32, tiled."""
    M, N = y.shape
    gm, gn = M // tm, N // tn
    return pl.pallas_call(
        functools.partial(_bn_act_kernel, alpha=alpha),
        out_shape=jax.ShapeDtypeStruct((M, N), jnp.float32),
        grid=(gm, gn),
        in_specs=[
            pl.BlockSpec((tm, tn), lambda i, j: (i, j)),
            pl.BlockSpec((1, tn), lambda i, j: (0, j)),
            pl.BlockSpec((1, tn), lambda i, j: (0, j)),
        ],
        out_specs=pl.BlockSpec((tm, tn), lambda i, j: (i, j)),
        compiler_params=pltpu.CompilerParams(
            dimension_semantics=("parallel", "parallel")),
    )(y, scale, shift)


# ----------------------------------------------------------------------------
# Plain-JAX glue
# ----------------------------------------------------------------------------
def _round_up(x, m):
    return (x + m - 1) // m * m


def _pick_tiles(M, K, N):
    """Tile sizes sized against the 64 MiB-VMEM (v7x) worst case; tm<=512."""
    Mp = _round_up(M, 16)
    if Mp >= 512:
        tm = 512
        Mp = _round_up(Mp, tm)
    else:
        tm = Mp
    Kp = _round_up(K, 128)
    tk = 512 if Kp % 512 == 0 else (256 if Kp % 256 == 0 else 128)
    Np = _round_up(N, 128)
    tn = 128
    return Mp, Kp, Np, tm, tk, tn


def im2col_nhwc(x, kh, kw, stride, pad):
    """x: (N, H, W, C) -> (patches (N*Ho*Wo, kh*kw*C), Ho, Wo).

    Column order is (kh major, kw, C minor), matching
    weight.transpose(2, 3, 1, 0).reshape(kh*kw*Cin, Cout).
    """
    Nb, H, W, C = x.shape
    xp = jnp.pad(x, ((0, 0), (pad, pad), (pad, pad), (0, 0)))
    Ho = (H + 2 * pad - kh) // stride + 1
    Wo = (W + 2 * pad - kw) // stride + 1
    cols = []
    for i in range(kh):
        for j in range(kw):
            cols.append(xp[:, i:i + stride * Ho:stride,
                           j:j + stride * Wo:stride, :])
    patches = jnp.stack(cols, axis=3)                  # (N, Ho, Wo, kh*kw, C)
    patches = patches.reshape(Nb * Ho * Wo, kh * kw * C)
    return patches, Ho, Wo


def conv_block(x, weight, stride, pad, bn_params, act):
    """Conv2d(bias=False) [+ BatchNorm(train stats) + LeakyReLU], NHWC in/out."""
    Cout, Cin, kh, kw = weight.shape
    Nb = x.shape[0]
    patches, Ho, Wo = im2col_nhwc(x, kh, kw, stride, pad)
    M, K = patches.shape
    wmat = jnp.transpose(weight, (2, 3, 1, 0)).reshape(kh * kw * Cin, Cout)

    Mp, Kp, Np, tm, tk, tn = _pick_tiles(M, K, Cout)
    # Zero-pad to lane/sublane-friendly shapes; MXU inputs in bf16, f32 acc.
    p = jnp.zeros((Mp, Kp), jnp.bfloat16).at[:M, :K].set(
        patches.astype(jnp.bfloat16))
    w = jnp.zeros((Kp, Np), jnp.bfloat16).at[:K, :Cout].set(
        wmat.astype(jnp.bfloat16))

    fuse_alpha = LEAKY_SLOPE if (act and bn_params is None) else None
    y, stats = conv_matmul(p, w, alpha=fuse_alpha, tm=tm, tn=tn, tk=tk)

    if bn_params is not None:
        gamma, beta = bn_params                              # (Cout,)
        s = jnp.sum(stats[:, 0, :], axis=0)                  # (Np,)
        ss = jnp.sum(stats[:, 1, :], axis=0)                 # (Np,)
        mean = s / M                                         # true row count
        var = jnp.maximum(ss / M - mean * mean, 0.0)         # biased (training)
        g = jnp.zeros((Np,), jnp.float32).at[:Cout].set(gamma)
        b = jnp.zeros((Np,), jnp.float32).at[:Cout].set(beta)
        scale = g * jax.lax.rsqrt(var + BN_EPS)
        shift = b - mean * scale
        y = bn_apply(y, scale[None, :], shift[None, :],
                     alpha=LEAKY_SLOPE if act else None, tm=tm, tn=tn)

    y = y[:M, :Cout].reshape(Nb, Ho, Wo, Cout)               # stay NHWC
    return y


# ----------------------------------------------------------------------------
# Encoder: parameter construction + forward (mirrors the PyTorch __init__)
# ----------------------------------------------------------------------------
def make_encoder_params(key, isize, nz, nc, ndf, n_extra_layers=0,
                        add_final_conv=True):
    assert isize % 16 == 0, "isize has to be a multiple of 16"
    blocks = []

    def conv_w(k, cout, cin, ksz):
        return 0.02 * jax.random.normal(k, (cout, cin, ksz, ksz), jnp.float32)

    def bn_p(c):
        # BatchNorm2d default init: weight=1, bias=0.
        return (jnp.ones((c,), jnp.float32), jnp.zeros((c,), jnp.float32))

    keys = jax.random.split(key, 16)
    ki = 0

    # initial conv nc -> ndf, 4x4 s2 p1, LeakyReLU (no BN)
    blocks.append(dict(w=conv_w(keys[ki], ndf, nc, 4), stride=2, pad=1,
                       bn=None, act=True)); ki += 1
    csize, cndf = isize // 2, ndf

    # extra layers: 3x3 s1 p1 conv + BN + LeakyReLU
    for _ in range(n_extra_layers):
        blocks.append(dict(w=conv_w(keys[ki], cndf, cndf, 3), stride=1, pad=1,
                           bn=bn_p(cndf), act=True)); ki += 1

    # pyramid: 4x4 s2 p1 conv + BN + LeakyReLU until csize == 4
    while csize > 4:
        in_feat, out_feat = cndf, cndf * 2
        blocks.append(dict(w=conv_w(keys[ki], out_feat, in_feat, 4), stride=2,
                           pad=1, bn=bn_p(out_feat), act=True)); ki += 1
        cndf, csize = cndf * 2, csize // 2

    # final conv cndf -> nz, 4x4 s1 p0, no activation
    if add_final_conv:
        blocks.append(dict(w=conv_w(keys[ki], nz, cndf, 4), stride=1, pad=0,
                           bn=None, act=False)); ki += 1
    return blocks


def encoder_forward(blocks, x_nchw):
    x = jnp.transpose(x_nchw, (0, 2, 3, 1))       # NCHW -> NHWC (once)
    for blk in blocks:
        x = conv_block(x, blk["w"], blk["stride"], blk["pad"],
                       blk["bn"], blk["act"])
    return jnp.transpose(x, (0, 3, 1, 2))         # NHWC -> NCHW (once)


# ----------------------------------------------------------------------------
if __name__ == "__main__":
    key = jax.random.PRNGKey(0)
    kp, kx = jax.random.split(key)

    # small DCGAN-encoder config: isize=16, nz=8, nc=3, ndf=16, 1 extra layer
    isize, nz, nc, ndf = 16, 8, 3, 16
    blocks = make_encoder_params(kp, isize, nz, nc, ndf, n_extra_layers=1,
                                 add_final_conv=True)

    x = jax.random.normal(kx, (2, nc, isize, isize), jnp.float32)  # NCHW

    fwd = jax.jit(functools.partial(encoder_forward, blocks))
    out = jax.block_until_ready(fwd(x))

    assert out.shape == (2, nz, 1, 1), out.shape
    assert out.dtype == jnp.float32
    assert bool(jnp.all(jnp.isfinite(out)))
    print("KERNEL_OK")
</pallas_src>

<mosaic_0001>
module attributes {stable_mosaic.version = 11 : i64} {
  func.func @_conv_mm_kernel(%arg0: i32, %arg1: i32, %arg2: i32, %arg3: memref<128x128xbf16, #tpu.memory_space<vmem>>, %arg4: memref<128x128xbf16, #tpu.memory_space<vmem>>, %arg5: memref<128x128xf32, #tpu.memory_space<vmem>>, %arg6: memref<1x2x128xf32, #tpu.memory_space<vmem>>, %arg7: memref<128x128xf32, #tpu.memory_space<vmem>>) attributes {dimension_semantics = [#tpu.dimension_semantics<parallel>, #tpu.dimension_semantics<parallel>, #tpu.dimension_semantics<arbitrary>], iteration_bounds = array<i64: 1, 1, 1>, scalar_prefetch = 0 : i64, scratch_operands = 1 : i64, tpu.core_type = #tpu.core_type<tc>, window_params = [{transform_indices = @transform_0, window_bounds = array<i64: 128, 128>}, {transform_indices = @transform_1, window_bounds = array<i64: 128, 128>}, {transform_indices = @transform_2, window_bounds = array<i64: 128, 128>}, {transform_indices = @transform_3, window_bounds = array<i64: 1, 2, 128>}]} {
    %c0_i32 = arith.constant 0 : i32
    %0 = arith.cmpi eq, %arg2, %c0_i32 : i32
    %1 = arith.extui %0 : i1 to i32
    %c0_i32_0 = arith.constant 0 : i32
    %2 = arith.cmpi ne, %1, %c0_i32_0 : i32
    scf.if %2 {
      %cst_10 = arith.constant 0.000000e+00 : f32
      %12 = vector.broadcast %cst_10 : f32 to vector<128x128xf32>
      %c0_11 = arith.constant 0 : index
      %c0_12 = arith.constant 0 : index
      %13 = vector.load %arg7[%c0_11, %c0_12] : memref<128x128xf32, #tpu.memory_space<vmem>>, vector<128x128xf32>
      tpu.vector_store %arg7[%c0_11, %c0_12], %12 {strides = array<i32>} : memref<128x128xf32, #tpu.memory_space<vmem>>, vector<128x128xf32>,
    } else {
    }
    %c0 = arith.constant 0 : index
    %c0_1 = arith.constant 0 : index
    %3 = vector.load %arg7[%c0, %c0_1] : memref<128x128xf32, #tpu.memory_space<vmem>>, vector<128x128xf32>
    %c0_2 = arith.constant 0 : index
    %c0_3 = arith.constant 0 : index
    %4 = vector.load %arg3[%c0_2, %c0_3] : memref<128x128xbf16, #tpu.memory_space<vmem>>, vector<128x128xbf16>
    %c0_4 = arith.constant 0 : index
    %c0_5 = arith.constant 0 : index
    %5 = vector.load %arg4[%c0_4, %c0_5] : memref<128x128xbf16, #tpu.memory_space<vmem>>, vector<128x128xbf16>
    %cst = arith.constant dense<0.000000e+00> : vector<128x128xf32>
    %6 = tpu.matmul %4, %5, %cst {dimension_numbers = #tpu.dot_dimension_numbers<[1], [0], [0], [1], [0, 0, 1, 1], [], []>} : vector<128x128xbf16>, vector<128x128xbf16>, vector<128x128xf32> -> vector<128x128xf32>
    %7 = arith.addf %3, %6 : vector<128x128xf32>
    %c0_6 = arith.constant 0 : index
    %c0_7 = arith.constant 0 : index
    %8 = vector.load %arg7[%c0_6, %c0_7] : memref<128x128xf32, #tpu.memory_space<vmem>>, vector<128x128xf32>
    tpu.vector_store %arg7[%c0_6, %c0_7], %7 {strides = array<i32>} : memref<128x128xf32, #tpu.memory_space<vmem>>, vector<128x128xf32>,
    %c0_i32_8 = arith.constant 0 : i32
    %9 = arith.cmpi eq, %arg2, %c0_i32_8 : i32
    %10 = arith.extui %9 : i1 to i32
    %c0_i32_9 = arith.constant 0 : i32
    %11 = arith.cmpi ne, %10, %c0_i32_9 : i32
    scf.if %11 {
      %c0_10 = arith.constant 0 : index
      %c0_11 = arith.constant 0 : index
      %12 = vector.load %arg7[%c0_10, %c0_11] : memref<128x128xf32, #tpu.memory_space<vmem>>, vector<128x128xf32>
      %cst_12 = arith.constant dense<0.000000e+00> : vector<128xf32>
      %13 = vector.multi_reduction <add>, %12, %cst_12 [0] : vector<128x128xf32> to vector<128xf32>
      %14 = vector.shape_cast %13 : vector<128xf32> to vector<1x128xf32>
      %15 = arith.mulf %12, %12 : vector<128x128xf32>
      %cst_13 = arith.constant dense<0.000000e+00> : vector<128xf32>
      %16 = vector.multi_reduction <add>, %15, %cst_13 [0] : vector<128x128xf32> to vector<128xf32>
      %17 = vector.shape_cast %16 : vector<128xf32> to vector<1x128xf32>
      %18 = tpu.concatenate %14, %17 in 0 : vector<1x128xf32>, vector<1x128xf32> -> vector<2x128xf32>
      %19 = vector.shape_cast %18 : vector<2x128xf32> to vector<1x2x128xf32>
      %c0_14 = arith.constant 0 : index
      %c0_15 = arith.constant 0 : index
      %c0_16 = arith.constant 0 : index
      %20 = vector.load %arg6[%c0_14, %c0_15, %c0_16] : memref<1x2x128xf32, #tpu.memory_space<vmem>>, vector<1x2x128xf32>
      tpu.vector_store %arg6[%c0_14, %c0_15, %c0_16], %19 {strides = array<i32>} : memref<1x2x128xf32, #tpu.memory_space<vmem>>, vector<1x2x128xf32>,
      %cst_17 = arith.constant 0.000000e+00 : f32
      %21 = vector.broadcast %cst_17 : f32 to vector<128x128xf32>
      %22 = arith.cmpf oge, %12, %21 : vector<128x128xf32>
      %cst_18 = arith.constant 2.000000e-01 : f32
      %23 = vector.broadcast %cst_18 : f32 to vector<128x128xf32>
      %24 = arith.mulf %23, %12 : vector<128x128xf32>
      %25 = arith.select %22, %12, %24 : vector<128x128xi1>, vector<128x128xf32>
      %c0_19 = arith.constant 0 : index
      %c0_20 = arith.constant 0 : index
      %26 = vector.load %arg5[%c0_19, %c0_20] : memref<128x128xf32, #tpu.memory_space<vmem>>, vector<128x128xf32>
      tpu.vector_store %arg5[%c0_19, %c0_20], %25 {strides = array<i32>} : memref<128x128xf32, #tpu.memory_space<vmem>>, vector<128x128xf32>,
    } else {
    }
    return
  }
  func.func @transform_0(%arg0: i32, %arg1: i32, %arg2: i32) -> (i32, i32) {
    %c0_i32 = arith.constant 0 : i32
    return %arg0, %arg2 : i32, i32
  }
  func.func @transform_1(%arg0: i32, %arg1: i32, %arg2: i32) -> (i32, i32) {
    %c0_i32 = arith.constant 0 : i32
    return %arg2, %arg1 : i32, i32
  }
  func.func @transform_2(%arg0: i32, %arg1: i32, %arg2: i32) -> (i32, i32) {
    %c0_i32 = arith.constant 0 : i32
    return %arg0, %arg1 : i32, i32
  }
  func.func @transform_3(%arg0: i32, %arg1: i32, %arg2: i32) -> (i32, i32, i32) {
    %c0_i32 = arith.constant 0 : i32
    %c0_i32_0 = arith.constant 0 : i32
    return %arg0, %c0_i32, %arg1 : i32, i32, i32
  }
}

module attributes {stable_mosaic.version = 11 : i64} {
  func.func @_conv_mm_kernel(%arg0: i32, %arg1: i32, %arg2: i32, %arg3: memref<128x256xbf16, #tpu.memory_space<vmem>>, %arg4: memref<256x128xbf16, #tpu.memory_space<vmem>>, %arg5: memref<128x128xf32, #tpu.memory_space<vmem>>, %arg6: memref<1x2x128xf32, #tpu.memory_space<vmem>>, %arg7: memref<128x128xf32, #tpu.memory_space<vmem>>) attributes {dimension_semantics = [#tpu.dimension_semantics<parallel>, #tpu.dimension_semantics<parallel>, #tpu.dimension_semantics<arbitrary>], iteration_bounds = array<i64: 1, 1, 1>, scalar_prefetch = 0 : i64, scratch_operands = 1 : i64, tpu.core_type = #tpu.core_type<tc>, window_params = [{transform_indices = @transform_0, window_bounds = array<i64: 128, 256>}, {transform_indices = @transform_1, window_bounds = array<i64: 256, 128>}, {transform_indices = @transform_2, window_bounds = array<i64: 128, 128>}, {transform_indices = @transform_3, window_bounds = array<i64: 1, 2, 128>}]} {
    %c0_i32 = arith.constant 0 : i32
    %0 = arith.cmpi eq, %arg2, %c0_i32 : i32
    %1 = arith.extui %0 : i1 to i32
    %c0_i32_0 = arith.constant 0 : i32
    %2 = arith.cmpi ne, %1, %c0_i32_0 : i32
    scf.if %2 {
      %cst_10 = arith.constant 0.000000e+00 : f32
      %12 = vector.broadcast %cst_10 : f32 to vector<128x128xf32>
      %c0_11 = arith.constant 0 : index
      %c0_12 = arith.constant 0 : index
      %13 = vector.load %arg7[%c0_11, %c0_12] : memref<128x128xf32, #tpu.memory_space<vmem>>, vector<128x128xf32>
      tpu.vector_store %arg7[%c0_11, %c0_12], %12 {strides = array<i32>} : memref<128x128xf32, #tpu.memory_space<vmem>>, vector<128x128xf32>,
    } else {
    }
    %c0 = arith.constant 0 : index
    %c0_1 = arith.constant 0 : index
    %3 = vector.load %arg7[%c0, %c0_1] : memref<128x128xf32, #tpu.memory_space<vmem>>, vector<128x128xf32>
    %c0_2 = arith.constant 0 : index
    %c0_3 = arith.constant 0 : index
    %4 = vector.load %arg3[%c0_2, %c0_3] : memref<128x256xbf16, #tpu.memory_space<vmem>>, vector<128x256xbf16>
    %c0_4 = arith.constant 0 : index
    %c0_5 = arith.constant 0 : index
    %5 = vector.load %arg4[%c0_4, %c0_5] : memref<256x128xbf16, #tpu.memory_space<vmem>>, vector<256x128xbf16>
    %cst = arith.constant dense<0.000000e+00> : vector<128x128xf32>
    %6 = tpu.matmul %4, %5, %cst {dimension_numbers = #tpu.dot_dimension_numbers<[1], [0], [0], [1], [0, 0, 1, 1], [], []>} : vector<128x256xbf16>, vector<256x128xbf16>, vector<128x128xf32> -> vector<128x128xf32>
    %7 = arith.addf %3, %6 : vector<128x128xf32>
    %c0_6 = arith.constant 0 : index
    %c0_7 = arith.constant 0 : index
    %8 = vector.load %arg7[%c0_6, %c0_7] : memref<128x128xf32, #tpu.memory_space<vmem>>, vector<128x128xf32>
    tpu.vector_store %arg7[%c0_6, %c0_7], %7 {strides = array<i32>} : memref<128x128xf32, #tpu.memory_space<vmem>>, vector<128x128xf32>,
    %c0_i32_8 = arith.constant 0 : i32
    %9 = arith.cmpi eq, %arg2, %c0_i32_8 : i32
    %10 = arith.extui %9 : i1 to i32
    %c0_i32_9 = arith.constant 0 : i32
    %11 = arith.cmpi ne, %10, %c0_i32_9 : i32
    scf.if %11 {
      %c0_10 = arith.constant 0 : index
      %c0_11 = arith.constant 0 : index
      %12 = vector.load %arg7[%c0_10, %c0_11] : memref<128x128xf32, #tpu.memory_space<vmem>>, vector<128x128xf32>
      %cst_12 = arith.constant dense<0.000000e+00> : vector<128xf32>
      %13 = vector.multi_reduction <add>, %12, %cst_12 [0] : vector<128x128xf32> to vector<128xf32>
      %14 = vector.shape_cast %13 : vector<128xf32> to vector<1x128xf32>
      %15 = arith.mulf %12, %12 : vector<128x128xf32>
      %cst_13 = arith.constant dense<0.000000e+00> : vector<128xf32>
      %16 = vector.multi_reduction <add>, %15, %cst_13 [0] : vector<128x128xf32> to vector<128xf32>
      %17 = vector.shape_cast %16 : vector<128xf32> to vector<1x128xf32>
      %18 = tpu.concatenate %14, %17 in 0 : vector<1x128xf32>, vector<1x128xf32> -> vector<2x128xf32>
      %19 = vector.shape_cast %18 : vector<2x128xf32> to vector<1x2x128xf32>
      %c0_14 = arith.constant 0 : index
      %c0_15 = arith.constant 0 : index
      %c0_16 = arith.constant 0 : index
      %20 = vector.load %arg6[%c0_14, %c0_15, %c0_16] : memref<1x2x128xf32, #tpu.memory_space<vmem>>, vector<1x2x128xf32>
      tpu.vector_store %arg6[%c0_14, %c0_15, %c0_16], %19 {strides = array<i32>} : memref<1x2x128xf32, #tpu.memory_space<vmem>>, vector<1x2x128xf32>,
      %c0_17 = arith.constant 0 : index
      %c0_18 = arith.constant 0 : index
      %21 = vector.load %arg5[%c0_17, %c0_18] : memref<128x128xf32, #tpu.memory_space<vmem>>, vector<128x128xf32>
      tpu.vector_store %arg5[%c0_17, %c0_18], %12 {strides = array<i32>} : memref<128x128xf32, #tpu.memory_space<vmem>>, vector<128x128xf32>,
    } else {
    }
    return
  }
  func.func @transform_0(%arg0: i32, %arg1: i32, %arg2: i32) -> (i32, i32) {
    %c0_i32 = arith.constant 0 : i32
    return %arg0, %arg2 : i32, i32
  }
  func.func @transform_1(%arg0: i32, %arg1: i32, %arg2: i32) -> (i32, i32) {
    %c0_i32 = arith.constant 0 : i32
    return %arg2, %arg1 : i32, i32
  }
  func.func @transform_2(%arg0: i32, %arg1: i32, %arg2: i32) -> (i32, i32) {
    %c0_i32 = arith.constant 0 : i32
    return %arg0, %arg1 : i32, i32
  }
  func.func @transform_3(%arg0: i32, %arg1: i32, %arg2: i32) -> (i32, i32, i32) {
    %c0_i32 = arith.constant 0 : i32
    %c0_i32_0 = arith.constant 0 : i32
    return %arg0, %c0_i32, %arg1 : i32, i32, i32
  }
}

module attributes {stable_mosaic.version = 11 : i64} {
  func.func @_bn_act_kernel(%arg0: i32, %arg1: i32, %arg2: memref<128x128xf32, #tpu.memory_space<vmem>>, %arg3: memref<1x128xf32, #tpu.memory_space<vmem>>, %arg4: memref<1x128xf32, #tpu.memory_space<vmem>>, %arg5: memref<128x128xf32, #tpu.memory_space<vmem>>) attributes {dimension_semantics = [#tpu.dimension_semantics<parallel>, #tpu.dimension_semantics<parallel>], iteration_bounds = array<i64: 1, 1>, scalar_prefetch = 0 : i64, scratch_operands = 0 : i64, tpu.core_type = #tpu.core_type<tc>, window_params = [{transform_indices = @transform_0, window_bounds = array<i64: 128, 128>}, {transform_indices = @transform_1, window_bounds = array<i64: 1, 128>}, {transform_indices = @transform_2, window_bounds = array<i64: 1, 128>}, {transform_indices = @transform_3, window_bounds = array<i64: 128, 128>}]} {
    %c0 = arith.constant 0 : index
    %c0_0 = arith.constant 0 : index
    %0 = vector.load %arg2[%c0, %c0_0] : memref<128x128xf32, #tpu.memory_space<vmem>>, vector<128x128xf32>
    %c0_1 = arith.constant 0 : index
    %c0_2 = arith.constant 0 : index
    %1 = vector.load %arg3[%c0_1, %c0_2] : memref<1x128xf32, #tpu.memory_space<vmem>>, vector<1x128xf32>
    %2 = vector.broadcast %1 : vector<1x128xf32> to vector<128x128xf32>
    %3 = arith.mulf %0, %2 : vector<128x128xf32>
    %c0_3 = arith.constant 0 : index
    %c0_4 = arith.constant 0 : index
    %4 = vector.load %arg4[%c0_3, %c0_4] : memref<1x128xf32, #tpu.memory_space<vmem>>, vector<1x128xf32>
    %5 = vector.broadcast %4 : vector<1x128xf32> to vector<128x128xf32>
    %6 = arith.addf %3, %5 : vector<128x128xf32>
    %cst = arith.constant 0.000000e+00 : f32
    %7 = vector.broadcast %cst : f32 to vector<128x128xf32>
    %8 = arith.cmpf oge, %6, %7 : vector<128x128xf32>
    %cst_5 = arith.constant 2.000000e-01 : f32
    %9 = vector.broadcast %cst_5 : f32 to vector<128x128xf32>
    %10 = arith.mulf %9, %6 : vector<128x128xf32>
    %11 = arith.select %8, %6, %10 : vector<128x128xi1>, vector<128x128xf32>
    %c0_6 = arith.constant 0 : index
    %c0_7 = arith.constant 0 : index
    %12 = vector.load %arg5[%c0_6, %c0_7] : memref<128x128xf32, #tpu.memory_space<vmem>>, vector<128x128xf32>
    tpu.vector_store %arg5[%c0_6, %c0_7], %11 {strides = array<i32>} : memref<128x128xf32, #tpu.memory_space<vmem>>, vector<128x128xf32>,
    return
  }
  func.func @transform_0(%arg0: i32, %arg1: i32) -> (i32, i32) {
    %c0_i32 = arith.constant 0 : i32
    return %arg0, %arg1 : i32, i32
  }
  func.func @transform_1(%arg0: i32, %arg1: i32) -> (i32, i32) {
    %c0_i32 = arith.constant 0 : i32
    %c0_i32_0 = arith.constant 0 : i32
    return %c0_i32, %arg1 : i32, i32
  }
  func.func @transform_2(%arg0: i32, %arg1: i32) -> (i32, i32) {
    %c0_i32 = arith.constant 0 : i32
    %c0_i32_0 = arith.constant 0 : i32
    return %c0_i32, %arg1 : i32, i32
  }
  func.func @transform_3(%arg0: i32, %arg1: i32) -> (i32, i32) {
    %c0_i32 = arith.constant 0 : i32
    return %arg0, %arg1 : i32, i32
  }
}

module attributes {stable_mosaic.version = 11 : i64} {
  func.func @_conv_mm_kernel(%arg0: i32, %arg1: i32, %arg2: i32, %arg3: memref<32x256xbf16, #tpu.memory_space<vmem>>, %arg4: memref<256x128xbf16, #tpu.memory_space<vmem>>, %arg5: memref<32x128xf32, #tpu.memory_space<vmem>>, %arg6: memref<1x2x128xf32, #tpu.memory_space<vmem>>, %arg7: memref<32x128xf32, #tpu.memory_space<vmem>>) attributes {dimension_semantics = [#tpu.dimension_semantics<parallel>, #tpu.dimension_semantics<parallel>, #tpu.dimension_semantics<arbitrary>], iteration_bounds = array<i64: 1, 1, 1>, scalar_prefetch = 0 : i64, scratch_operands = 1 : i64, tpu.core_type = #tpu.core_type<tc>, window_params = [{transform_indices = @transform_0, window_bounds = array<i64: 32, 256>}, {transform_indices = @transform_1, window_bounds = array<i64: 256, 128>}, {transform_indices = @transform_2, window_bounds = array<i64: 32, 128>}, {transform_indices = @transform_3, window_bounds = array<i64: 1, 2, 128>}]} {
    %c0_i32 = arith.constant 0 : i32
    %0 = arith.cmpi eq, %arg2, %c0_i32 : i32
    %1 = arith.extui %0 : i1 to i32
    %c0_i32_0 = arith.constant 0 : i32
    %2 = arith.cmpi ne, %1, %c0_i32_0 : i32
    scf.if %2 {
      %cst_10 = arith.constant 0.000000e+00 : f32
      %12 = vector.broadcast %cst_10 : f32 to vector<32x128xf32>
      %c0_11 = arith.constant 0 : index
      %c0_12 = arith.constant 0 : index
      %13 = vector.load %arg7[%c0_11, %c0_12] : memref<32x128xf32, #tpu.memory_space<vmem>>, vector<32x128xf32>
      tpu.vector_store %arg7[%c0_11, %c0_12], %12 {strides = array<i32>} : memref<32x128xf32, #tpu.memory_space<vmem>>, vector<32x128xf32>,
    } else {
    }
    %c0 = arith.constant 0 : index
    %c0_1 = arith.constant 0 : index
    %3 = vector.load %arg7[%c0, %c0_1] : memref<32x128xf32, #tpu.memory_space<vmem>>, vector<32x128xf32>
    %c0_2 = arith.constant 0 : index
    %c0_3 = arith.constant 0 : index
    %4 = vector.load %arg3[%c0_2, %c0_3] : memref<32x256xbf16, #tpu.memory_space<vmem>>, vector<32x256xbf16>
    %c0_4 = arith.constant 0 : index
    %c0_5 = arith.constant 0 : index
    %5 = vector.load %arg4[%c0_4, %c0_5] : memref<256x128xbf16, #tpu.memory_space<vmem>>, vector<256x128xbf16>
    %cst = arith.constant dense<0.000000e+00> : vector<32x128xf32>
    %6 = tpu.matmul %4, %5, %cst {dimension_numbers = #tpu.dot_dimension_numbers<[1], [0], [0], [1], [0, 0, 1, 1], [], []>} : vector<32x256xbf16>, vector<256x128xbf16>, vector<32x128xf32> -> vector<32x128xf32>
    %7 = arith.addf %3, %6 : vector<32x128xf32>
    %c0_6 = arith.constant 0 : index
    %c0_7 = arith.constant 0 : index
    %8 = vector.load %arg7[%c0_6, %c0_7] : memref<32x128xf32, #tpu.memory_space<vmem>>, vector<32x128xf32>
    tpu.vector_store %arg7[%c0_6, %c0_7], %7 {strides = array<i32>} : memref<32x128xf32, #tpu.memory_space<vmem>>, vector<32x128xf32>,
    %c0_i32_8 = arith.constant 0 : i32
    %9 = arith.cmpi eq, %arg2, %c0_i32_8 : i32
    %10 = arith.extui %9 : i1 to i32
    %c0_i32_9 = arith.constant 0 : i32
    %11 = arith.cmpi ne, %10, %c0_i32_9 : i32
    scf.if %11 {
      %c0_10 = arith.constant 0 : index
      %c0_11 = arith.constant 0 : index
      %12 = vector.load %arg7[%c0_10, %c0_11] : memref<32x128xf32, #tpu.memory_space<vmem>>, vector<32x128xf32>
      %cst_12 = arith.constant dense<0.000000e+00> : vector<128xf32>
      %13 = vector.multi_reduction <add>, %12, %cst_12 [0] : vector<32x128xf32> to vector<128xf32>
      %14 = vector.shape_cast %13 : vector<128xf32> to vector<1x128xf32>
      %15 = arith.mulf %12, %12 : vector<32x128xf32>
      %cst_13 = arith.constant dense<0.000000e+00> : vector<128xf32>
      %16 = vector.multi_reduction <add>, %15, %cst_13 [0] : vector<32x128xf32> to vector<128xf32>
      %17 = vector.shape_cast %16 : vector<128xf32> to vector<1x128xf32>
      %18 = tpu.concatenate %14, %17 in 0 : vector<1x128xf32>, vector<1x128xf32> -> vector<2x128xf32>
      %19 = vector.shape_cast %18 : vector<2x128xf32> to vector<1x2x128xf32>
      %c0_14 = arith.constant 0 : index
      %c0_15 = arith.constant 0 : index
      %c0_16 = arith.constant 0 : index
      %20 = vector.load %arg6[%c0_14, %c0_15, %c0_16] : memref<1x2x128xf32, #tpu.memory_space<vmem>>, vector<1x2x128xf32>
      tpu.vector_store %arg6[%c0_14, %c0_15, %c0_16], %19 {strides = array<i32>} : memref<1x2x128xf32, #tpu.memory_space<vmem>>, vector<1x2x128xf32>,
      %c0_17 = arith.constant 0 : index
      %c0_18 = arith.constant 0 : index
      %21 = vector.load %arg5[%c0_17, %c0_18] : memref<32x128xf32, #tpu.memory_space<vmem>>, vector<32x128xf32>
      tpu.vector_store %arg5[%c0_17, %c0_18], %12 {strides = array<i32>} : memref<32x128xf32, #tpu.memory_space<vmem>>, vector<32x128xf32>,
    } else {
    }
    return
  }
  func.func @transform_0(%arg0: i32, %arg1: i32, %arg2: i32) -> (i32, i32) {
    %c0_i32 = arith.constant 0 : i32
    return %arg0, %arg2 : i32, i32
  }
  func.func @transform_1(%arg0: i32, %arg1: i32, %arg2: i32) -> (i32, i32) {
    %c0_i32 = arith.constant 0 : i32
    return %arg2, %arg1 : i32, i32
  }
  func.func @transform_2(%arg0: i32, %arg1: i32, %arg2: i32) -> (i32, i32) {
    %c0_i32 = arith.constant 0 : i32
    return %arg0, %arg1 : i32, i32
  }
  func.func @transform_3(%arg0: i32, %arg1: i32, %arg2: i32) -> (i32, i32, i32) {
    %c0_i32 = arith.constant 0 : i32
    %c0_i32_0 = arith.constant 0 : i32
    return %arg0, %c0_i32, %arg1 : i32, i32, i32
  }
}

module attributes {stable_mosaic.version = 11 : i64} {
  func.func @_bn_act_kernel(%arg0: i32, %arg1: i32, %arg2: memref<32x128xf32, #tpu.memory_space<vmem>>, %arg3: memref<1x128xf32, #tpu.memory_space<vmem>>, %arg4: memref<1x128xf32, #tpu.memory_space<vmem>>, %arg5: memref<32x128xf32, #tpu.memory_space<vmem>>) attributes {dimension_semantics = [#tpu.dimension_semantics<parallel>, #tpu.dimension_semantics<parallel>], iteration_bounds = array<i64: 1, 1>, scalar_prefetch = 0 : i64, scratch_operands = 0 : i64, tpu.core_type = #tpu.core_type<tc>, window_params = [{transform_indices = @transform_0, window_bounds = array<i64: 32, 128>}, {transform_indices = @transform_1, window_bounds = array<i64: 1, 128>}, {transform_indices = @transform_2, window_bounds = array<i64: 1, 128>}, {transform_indices = @transform_3, window_bounds = array<i64: 32, 128>}]} {
    %c0 = arith.constant 0 : index
    %c0_0 = arith.constant 0 : index
    %0 = vector.load %arg2[%c0, %c0_0] : memref<32x128xf32, #tpu.memory_space<vmem>>, vector<32x128xf32>
    %c0_1 = arith.constant 0 : index
    %c0_2 = arith.constant 0 : index
    %1 = vector.load %arg3[%c0_1, %c0_2] : memref<1x128xf32, #tpu.memory_space<vmem>>, vector<1x128xf32>
    %2 = vector.broadcast %1 : vector<1x128xf32> to vector<32x128xf32>
    %3 = arith.mulf %0, %2 : vector<32x128xf32>
    %c0_3 = arith.constant 0 : index
    %c0_4 = arith.constant 0 : index
    %4 = vector.load %arg4[%c0_3, %c0_4] : memref<1x128xf32, #tpu.memory_space<vmem>>, vector<1x128xf32>
    %5 = vector.broadcast %4 : vector<1x128xf32> to vector<32x128xf32>
    %6 = arith.addf %3, %5 : vector<32x128xf32>
    %cst = arith.constant 0.000000e+00 : f32
    %7 = vector.broadcast %cst : f32 to vector<32x128xf32>
    %8 = arith.cmpf oge, %6, %7 : vector<32x128xf32>
    %cst_5 = arith.constant 2.000000e-01 : f32
    %9 = vector.broadcast %cst_5 : f32 to vector<32x128xf32>
    %10 = arith.mulf %9, %6 : vector<32x128xf32>
    %11 = arith.select %8, %6, %10 : vector<32x128xi1>, vector<32x128xf32>
    %c0_6 = arith.constant 0 : index
    %c0_7 = arith.constant 0 : index
    %12 = vector.load %arg5[%c0_6, %c0_7] : memref<32x128xf32, #tpu.memory_space<vmem>>, vector<32x128xf32>
    tpu.vector_store %arg5[%c0_6, %c0_7], %11 {strides = array<i32>} : memref<32x128xf32, #tpu.memory_space<vmem>>, vector<32x128xf32>,
    return
  }
  func.func @transform_0(%arg0: i32, %arg1: i32) -> (i32, i32) {
    %c0_i32 = arith.constant 0 : i32
    return %arg0, %arg1 : i32, i32
  }
  func.func @transform_1(%arg0: i32, %arg1: i32) -> (i32, i32) {
    %c0_i32 = arith.constant 0 : i32
    %c0_i32_0 = arith.constant 0 : i32
    return %c0_i32, %arg1 : i32, i32
  }
  func.func @transform_2(%arg0: i32, %arg1: i32) -> (i32, i32) {
    %c0_i32 = arith.constant 0 : i32
    %c0_i32_0 = arith.constant 0 : i32
    return %c0_i32, %arg1 : i32, i32
  }
  func.func @transform_3(%arg0: i32, %arg1: i32) -> (i32, i32) {
    %c0_i32 = arith.constant 0 : i32
    return %arg0, %arg1 : i32, i32
  }
}

module attributes {stable_mosaic.version = 11 : i64} {
  func.func @_conv_mm_kernel(%arg0: i32, %arg1: i32, %arg2: i32, %arg3: memref<16x512xbf16, #tpu.memory_space<vmem>>, %arg4: memref<512x128xbf16, #tpu.memory_space<vmem>>, %arg5: memref<16x128xf32, #tpu.memory_space<vmem>>, %arg6: memref<1x2x128xf32, #tpu.memory_space<vmem>>, %arg7: memref<16x128xf32, #tpu.memory_space<vmem>>) attributes {dimension_semantics = [#tpu.dimension_semantics<parallel>, #tpu.dimension_semantics<parallel>, #tpu.dimension_semantics<arbitrary>], iteration_bounds = array<i64: 1, 1, 1>, scalar_prefetch = 0 : i64, scratch_operands = 1 : i64, tpu.core_type = #tpu.core_type<tc>, window_params = [{transform_indices = @transform_0, window_bounds = array<i64: 16, 512>}, {transform_indices = @transform_1, window_bounds = array<i64: 512, 128>}, {transform_indices = @transform_2, window_bounds = array<i64: 16, 128>}, {transform_indices = @transform_3, window_bounds = array<i64: 1, 2, 128>}]} {
    %c0_i32 = arith.constant 0 : i32
    %0 = arith.cmpi eq, %arg2, %c0_i32 : i32
    %1 = arith.extui %0 : i1 to i32
    %c0_i32_0 = arith.constant 0 : i32
    %2 = arith.cmpi ne, %1, %c0_i32_0 : i32
    scf.if %2 {
      %cst_10 = arith.constant 0.000000e+00 : f32
      %12 = vector.broadcast %cst_10 : f32 to vector<16x128xf32>
      %c0_11 = arith.constant 0 : index
      %c0_12 = arith.constant 0 : index
      %13 = vector.load %arg7[%c0_11, %c0_12] : memref<16x128xf32, #tpu.memory_space<vmem>>, vector<16x128xf32>
      tpu.vector_store %arg7[%c0_11, %c0_12], %12 {strides = array<i32>} : memref<16x128xf32, #tpu.memory_space<vmem>>, vector<16x128xf32>,
    } else {
    }
    %c0 = arith.constant 0 : index
    %c0_1 = arith.constant 0 : index
    %3 = vector.load %arg7[%c0, %c0_1] : memref<16x128xf32, #tpu.memory_space<vmem>>, vector<16x128xf32>
    %c0_2 = arith.constant 0 : index
    %c0_3 = arith.constant 0 : index
    %4 = vector.load %arg3[%c0_2, %c0_3] : memref<16x512xbf16, #tpu.memory_space<vmem>>, vector<16x512xbf16>
    %c0_4 = arith.constant 0 : index
    %c0_5 = arith.constant 0 : index
    %5 = vector.load %arg4[%c0_4, %c0_5] : memref<512x128xbf16, #tpu.memory_space<vmem>>, vector<512x128xbf16>
    %cst = arith.constant dense<0.000000e+00> : vector<16x128xf32>
    %6 = tpu.matmul %4, %5, %cst {dimension_numbers = #tpu.dot_dimension_numbers<[1], [0], [0], [1], [0, 0, 1, 1], [], []>} : vector<16x512xbf16>, vector<512x128xbf16>, vector<16x128xf32> -> vector<16x128xf32>
    %7 = arith.addf %3, %6 : vector<16x128xf32>
    %c0_6 = arith.constant 0 : index
    %c0_7 = arith.constant 0 : index
    %8 = vector.load %arg7[%c0_6, %c0_7] : memref<16x128xf32, #tpu.memory_space<vmem>>, vector<16x128xf32>
    tpu.vector_store %arg7[%c0_6, %c0_7], %7 {strides = array<i32>} : memref<16x128xf32, #tpu.memory_space<vmem>>, vector<16x128xf32>,
    %c0_i32_8 = arith.constant 0 : i32
    %9 = arith.cmpi eq, %arg2, %c0_i32_8 : i32
    %10 = arith.extui %9 : i1 to i32
    %c0_i32_9 = arith.constant 0 : i32
    %11 = arith.cmpi ne, %10, %c0_i32_9 : i32
    scf.if %11 {
      %c0_10 = arith.constant 0 : index
      %c0_11 = arith.constant 0 : index
      %12 = vector.load %arg7[%c0_10, %c0_11] : memref<16x128xf32, #tpu.memory_space<vmem>>, vector<16x128xf32>
      %cst_12 = arith.constant dense<0.000000e+00> : vector<128xf32>
      %13 = vector.multi_reduction <add>, %12, %cst_12 [0] : vector<16x128xf32> to vector<128xf32>
      %14 = vector.shape_cast %13 : vector<128xf32> to vector<1x128xf32>
      %15 = arith.mulf %12, %12 : vector<16x128xf32>
      %cst_13 = arith.constant dense<0.000000e+00> : vector<128xf32>
      %16 = vector.multi_reduction <add>, %15, %cst_13 [0] : vector<16x128xf32> to vector<128xf32>
      %17 = vector.shape_cast %16 : vector<128xf32> to vector<1x128xf32>
      %18 = tpu.concatenate %14, %17 in 0 : vector<1x128xf32>, vector<1x128xf32> -> vector<2x128xf32>
      %19 = vector.shape_cast %18 : vector<2x128xf32> to vector<1x2x128xf32>
      %c0_14 = arith.constant 0 : index
      %c0_15 = arith.constant 0 : index
      %c0_16 = arith.constant 0 : index
      %20 = vector.load %arg6[%c0_14, %c0_15, %c0_16] : memref<1x2x128xf32, #tpu.memory_space<vmem>>, vector<1x2x128xf32>
      tpu.vector_store %arg6[%c0_14, %c0_15, %c0_16], %19 {strides = array<i32>} : memref<1x2x128xf32, #tpu.memory_space<vmem>>, vector<1x2x128xf32>,
      %c0_17 = arith.constant 0 : index
      %c0_18 = arith.constant 0 : index
      %21 = vector.load %arg5[%c0_17, %c0_18] : memref<16x128xf32, #tpu.memory_space<vmem>>, vector<16x128xf32>
      tpu.vector_store %arg5[%c0_17, %c0_18], %12 {strides = array<i32>} : memref<16x128xf32, #tpu.memory_space<vmem>>, vector<16x128xf32>,
    } else {
    }
    return
  }
  func.func @transform_0(%arg0: i32, %arg1: i32, %arg2: i32) -> (i32, i32) {
    %c0_i32 = arith.constant 0 : i32
    return %arg0, %arg2 : i32, i32
  }
  func.func @transform_1(%arg0: i32, %arg1: i32, %arg2: i32) -> (i32, i32) {
    %c0_i32 = arith.constant 0 : i32
    return %arg2, %arg1 : i32, i32
  }
  func.func @transform_2(%arg0: i32, %arg1: i32, %arg2: i32) -> (i32, i32) {
    %c0_i32 = arith.constant 0 : i32
    return %arg0, %arg1 : i32, i32
  }
  func.func @transform_3(%arg0: i32, %arg1: i32, %arg2: i32) -> (i32, i32, i32) {
    %c0_i32 = arith.constant 0 : i32
    %c0_i32_0 = arith.constant 0 : i32
    return %arg0, %c0_i32, %arg1 : i32, i32, i32
  }
}

</mosaic_0001>

<bundles_post_ra>
// kernel: encoder_forward.6
= control target key start
LH: loop header
LB: loop body
LE: loop exit
PB: predicated region body
PF: predicated region fallthrough
CT: control target
= control target key end

     0   :  { %s780_s0 = inlined_call_operand.vmem [shape: bf16[128,128], index: 0, kind: input, shape index: {}]   ;;  %s781_s1 = inlined_call_operand.vmem [shape: bf16[128,128], index: 1, kind: input, shape index: {}]   ;;  %s782_s2 = inlined_call_operand.vmem [shape: f32[128,128], index: 2, kind: output, shape index: {0}]   ;;  %s783_s3 = inlined_call_operand.hbm [shape: f32[1,2,128], index: 3, kind: output, shape index: {1}]  }
   0x1   :  { %v551_v0 = vld [vmem:[%s781_s1] sm:$0xff]   ;;  %v552_v1 = vld [vmem:[%s781_s1 + $0x8] sm:$0xff]   ;;  %v553_v2 = vld [vmem:[%s781_s1 + $0x10] sm:$0xff]  }
   0x2   :  { %502 = vmatprep.subr.bf16.mxu0 %v551_v0  ;;  %534 = vmatprep.subr.bf16.mxu1 %v551_v0  ;;  %v554_v3 = vld [vmem:[%s781_s1 + $0x18] sm:$0xff]   ;;  %v559_v4 = vld [vmem:[%s780_s0] sm:$0xff]   ;;  %v556_v7 = vld [vmem:[%s781_s1 + $0x28] sm:$0xff]  }
   0x3   :  { %503 = vmatpush3.bf16.msra.mxu0 %v551_v0  ;;  %542 = vmatpush3.bf16.msra.mxu1 %v551_v0  ;;  %v555_v5 = vld [vmem:[%s781_s1 + $0x20] sm:$0xff]  }
   0x4   :  { %504 = vmatprep.subr.bf16.mxu0 %v552_v1  ;;  %535 = vmatprep.subr.bf16.mxu1 %v552_v1  ;;  %v563_v6 = vld [vmem:[%s780_s0 + $0x20] sm:$0xff]  }
   0x5   :  { %518 = vmatprep.mubr.bf16.mxu0 %v559_v4  ;;  %526 = vmatprep.mubr.bf16.mxu1 %v563_v6 }
   0x7   :  { %505 = vmatpush3.bf16.msra.mxu0 %v552_v1  ;;  %543 = vmatpush3.bf16.msra.mxu1 %v552_v1 }
   0x8   :  { %506 = vmatprep.subr.bf16.mxu0 %v553_v2  ;;  %536 = vmatprep.subr.bf16.mxu1 %v553_v2 }
   0xb   :  { %507 = vmatpush3.bf16.msra.mxu0 %v553_v2  ;;  %544 = vmatpush3.bf16.msra.mxu1 %v553_v2 }
   0xc   :  { %508 = vmatprep.subr.bf16.mxu0 %v554_v3  ;;  %537 = vmatprep.subr.bf16.mxu1 %v554_v3 }
   0xf   :  { %509 = vmatpush3.bf16.msra.mxu0 %v554_v3  ;;  %545 = vmatpush3.bf16.msra.mxu1 %v554_v3 }
  0x10   :  { %510 = vmatprep.subr.bf16.mxu0 %v555_v5  ;;  %538 = vmatprep.subr.bf16.mxu1 %v555_v5 }
  0x11   :  { %9 = vsyncpa [#allocation4], 0  ;;  %v557_v8 = vld [vmem:[%s781_s1 + $0x30] sm:$0xff]   ;;  %v558_v9 = vld [vmem:[%s781_s1 + $0x38] sm:$0xff]  }
  0x12   :  { %v560_v10 = vld [vmem:[%s780_s0 + $0x8] sm:$0xff]   ;;  %v561_v12 = vld [vmem:[%s780_s0 + $0x10] sm:$0xff]   ;;  %v562_v14 = vld [vmem:[%s780_s0 + $0x18] sm:$0xff]  }
  0x13   :  { %511 = vmatpush3.bf16.msra.mxu0 %v555_v5  ;;  %546 = vmatpush3.bf16.msra.mxu1 %v555_v5  ;;  %v564_v11 = vld [vmem:[%s780_s0 + $0x28] sm:$0xff]   ;;  %v565_v13 = vld [vmem:[%s780_s0 + $0x30] sm:$0xff]   ;;  %v566_v15 = vld [vmem:[%s780_s0 + $0x38] sm:$0xff]  }
  0x14   :  { %512 = vmatprep.subr.bf16.mxu0 %v556_v7  ;;  %539 = vmatprep.subr.bf16.mxu1 %v556_v7 }
  0x17   :  { %513 = vmatpush3.bf16.msra.mxu0 %v556_v7  ;;  %547 = vmatpush3.bf16.msra.mxu1 %v556_v7 }
  0x18   :  { %514 = vmatprep.subr.bf16.mxu0 %v557_v8  ;;  %540 = vmatprep.subr.bf16.mxu1 %v557_v8 }
  0x1b   :  { %515 = vmatpush3.bf16.msra.mxu0 %v557_v8  ;;  %548 = vmatpush3.bf16.msra.mxu1 %v557_v8 }
  0x1c   :  { %516 = vmatprep.subr.bf16.mxu0 %v558_v9  ;;  %541 = vmatprep.subr.bf16.mxu1 %v558_v9 }
  0x1f   :  { %517 = vmatpush3.bf16.msra.mxu0 %v558_v9  ;;  %549 = vmatpush3.bf16.msra.mxu1 %v558_v9 }
  0x22   :  { %519 = vmatmul.mubr.bf16.vlgmr.msra.gmra.mrb[0].mxu0 %v560_v10  ;;  %527 = vmatmul.mubr.bf16.vlgmr.msra.gmra.mrb[0].mxu1 %v564_v11 }
  0x23   :  { %522 = vmatprep.mubr.bf16.mxu0 %v561_v12  ;;  %530 = vmatprep.mubr.bf16.mxu1 %v565_v13 }
  0x2a   :  { %523 = vmatmul.mubr.bf16.gmra.mrb[4].mxu0 %v562_v14  ;;  %531 = vmatmul.mubr.bf16.gmra.mrb[4].mxu1 %v566_v15 }
  0xf5   :  { %v520_v16 = vpop.f32.mrb[0].mxu0  ;;  %v660_v17 = vpop.f32.mrb[0].mxu1 }
  0xf6   :  { %vm390_vm0 = vcmp.ge.f32.partialorder %v520_v16, 0.0  ;;  %v406_v18 = vmul.f32 0.2, %v520_v16  ;;  %v213_v19 = vpop.f32.mrb[1].mxu0  ;;  %v662_v20 = vpop.f32.mrb[1].mxu1  ;;  %vm398_vm3 = vcmp.ge.f32.partialorder %v660_v17, 0.0  ;;  %v350_v32 = vmul.f32 %v520_v16, %v520_v16 }
  0xf7   :  { %v348_v21 = vmul.f32 %v213_v19, %v213_v19  ;;  %vm388_vm1 = vcmp.ge.f32.partialorder %v213_v19, 0.0  ;;  %v404_v22 = vmul.f32 0.2, %v213_v19  ;;  %v521_v23 = vpop.f32.mrb[2].mxu0  ;;  %v664_v24 = vpop.f32.mrb[2].mxu1  ;;  %vm396_vm5 = vcmp.ge.f32.partialorder %v662_v20, 0.0 }
  0xf8   :  { %v422_v25 = vsel %vm390_vm0, %v520_v16, %v406_v18  ;;  %vm391_vm2 = vcmp.ge.f32.partialorder %v521_v23, 0.0  ;;  %v407_v26 = vmul.f32 0.2, %v521_v23  ;;  %v216_v27 = vpop.f32.mrb[3].mxu0  ;;  %v667_v28 = vpop.f32.mrb[3].mxu1  ;;  %v351_v47 = vmul.f32 %v521_v23, %v521_v23 }
  0xf9   :  { %438 = vst [vmem:[%s782_s2 + $0x10] sm:$0xff] %v422_v25  ;;  %v420_v29 = vsel %vm388_vm1, %v213_v19, %v404_v22  ;;  %v327_v30 = vadd.f32 %v216_v27, %v213_v19  ;;  %v349_v31 = vmul.f32 %v216_v27, %v216_v27  ;;  %vm389_vm4 = vcmp.ge.f32.partialorder %v216_v27, 0.0 }
  0xfa   :  { %436 = vst [vmem:[%s782_s2] sm:$0xff] %v420_v29  ;;  %v423_v33 = vsel %vm391_vm2, %v521_v23, %v407_v26  ;;  %v405_v34 = vmul.f32 0.2, %v216_v27  ;;  %v414_v35 = vmul.f32 0.2, %v660_v17  ;;  %v412_v38 = vmul.f32 0.2, %v662_v20 }
  0xfb   :  { %439 = vst [vmem:[%s782_s2 + $0x18] sm:$0xff] %v423_v33  ;;  %v328_v36 = vadd.f32 %v520_v16, %v327_v30  ;;  %v364_v37 = vadd.f32 %v349_v31, %v348_v21  ;;  %v415_v45 = vmul.f32 0.2, %v664_v24  ;;  %vm399_vm7 = vcmp.ge.f32.partialorder %v664_v24, 0.0 }
  0xfc   :  { %v421_v39 = vsel %vm389_vm4, %v216_v27, %v405_v34  ;;  %v430_v40 = vsel %vm398_vm3, %v660_v17, %v414_v35  ;;  %v428_v44 = vsel %vm396_vm5, %v662_v20, %v412_v38  ;;  %vm397_vm11 = vcmp.ge.f32.partialorder %v667_v28, 0.0 }
  0xfd   :  { %v365_v41 = vadd.f32 %v364_v37, %v350_v32  ;;  %437 = vst [vmem:[%s782_s2 + $0x8] sm:$0xff] %v421_v39  ;;  %v524_v42 = vpop.f32.mrb[4].mxu0  ;;  %v329_v43 = vadd.f32 %v521_v23, %v328_v36  ;;  %446 = vst [vmem:[%s782_s2 + $0x50] sm:$0xff] %v430_v40  ;;  %v692_v46 = vpop.f32.mrb[4].mxu1  ;;  %v431_v2 = vsel %vm399_vm7, %v664_v24, %v415_v45  ;;  %v413_v5 = vmul.f32 0.2, %v667_v28 }
  0xfe   :  { %vm394_vm6 = vcmp.ge.f32.partialorder %v524_v42, 0.0  ;;  %v410_v48 = vmul.f32 0.2, %v524_v42  ;;  %v229_v49 = vpop.f32.mrb[5].mxu0  ;;  %444 = vst [vmem:[%s782_s2 + $0x40] sm:$0xff] %v428_v44  ;;  %v698_v50 = vpop.f32.mrb[5].mxu1  ;;  %v356_v7 = vmul.f32 %v662_v20, %v662_v20  ;;  %v354_v9 = vmul.f32 %v524_v42, %v524_v42 }
  0xff   :  { %v352_v51 = vmul.f32 %v229_v49, %v229_v49  ;;  %vm392_vm8 = vcmp.ge.f32.partialorder %v229_v49, 0.0  ;;  %v408_v52 = vmul.f32 0.2, %v229_v49  ;;  %v525_v53 = vpop.f32.mrb[6].mxu0  ;;  %v330_v54 = vadd.f32 %v329_v43, %v229_v49  ;;  %v700_v55 = vpop.f32.mrb[6].mxu1  ;;  %447 = vst [vmem:[%s782_s2 + $0x58] sm:$0xff] %v431_v2 }
 0x100   :  { %v426_v56 = vsel %vm394_vm6, %v524_v42, %v410_v48  ;;  %vm395_vm9 = vcmp.ge.f32.partialorder %v525_v53, 0.0  ;;  %v411_v57 = vmul.f32 0.2, %v525_v53  ;;  %v232_v58 = vpop.f32.mrb[7].mxu0  ;;  %v264_v59 = vpop.f32.mrb[7].mxu1  ;;  %v366_v63 = vadd.f32 %v365_v41, %v351_v47 }
 0x101   :  { %442 = vst [vmem:[%s782_s2 + $0x30] sm:$0xff] %v426_v56  ;;  %v424_v60 = vsel %vm392_vm8, %v229_v49, %v408_v52  ;;  %v331_v61 = vadd.f32 %v330_v54, %v232_v58  ;;  %v353_v62 = vmul.f32 %v232_v58, %v232_v58  ;;  %vm393_vm10 = vcmp.ge.f32.partialorder %v232_v58, 0.0 }
 0x102   :  { %440 = vst [vmem:[%s782_s2 + $0x20] sm:$0xff] %v424_v60  ;;  %v427_v0 = vsel %vm395_vm9, %v525_v53, %v411_v57  ;;  %v409_v1 = vmul.f32 0.2, %v232_v58  ;;  %v367_v4 = vadd.f32 %v366_v63, %v352_v51  ;;  %vm402_vm12 = vcmp.ge.f32.partialorder %v692_v46, 0.0 }
 0x103   :  { %443 = vst [vmem:[%s782_s2 + $0x38] sm:$0xff] %v427_v0  ;;  %v332_v3 = vadd.f32 %v524_v42, %v331_v61  ;;  %v418_v8 = vmul.f32 0.2, %v692_v46  ;;  %v429_v12 = vsel %vm397_vm11, %v667_v28, %v413_v5  ;;  %v355_v13 = vmul.f32 %v525_v53, %v525_v53 }
 0x104   :  { %v425_v6 = vsel %vm393_vm10, %v232_v58, %v409_v1  ;;  %v368_v11 = vadd.f32 %v367_v4, %v353_v62  ;;  %445 = vst [vmem:[%s782_s2 + $0x48] sm:$0xff] %v429_v12  ;;  %vm400_vm13 = vcmp.ge.f32.partialorder %v698_v50, 0.0  ;;  %v416_v15 = vmul.f32 0.2, %v698_v50 }
 0x105   :  { %v333_v10 = vadd.f32 %v525_v53, %v332_v3  ;;  %441 = vst [vmem:[%s782_s2 + $0x28] sm:$0xff] %v425_v6  ;;  %v434_v14 = vsel %vm402_vm12, %v692_v46, %v418_v8  ;;  %vm403_vm14 = vcmp.ge.f32.partialorder %v700_v55, 0.0  ;;  %v419_v19 = vmul.f32 0.2, %v700_v55 }
 0x106   :  { %v369_v16 = vadd.f32 %v368_v11, %v354_v9  ;;  %450 = vst [vmem:[%s782_s2 + $0x70] sm:$0xff] %v434_v14  ;;  %v432_v21 = vsel %vm400_vm13, %v698_v50, %v416_v15  ;;  %vm401_vm15 = vcmp.ge.f32.partialorder %v264_v59, 0.0  ;;  %v417_v22 = vmul.f32 0.2, %v264_v59 }
 0x107   :  { %v334_v18 = vadd.f32 %v333_v10, %v662_v20  ;;  %448 = vst [vmem:[%s782_s2 + $0x60] sm:$0xff] %v432_v21  ;;  %v435_v20 = vsel %vm403_vm14, %v700_v55, %v419_v19  ;;  %v357_v30 = vmul.f32 %v667_v28, %v667_v28  ;;  %v358_v31 = vmul.f32 %v660_v17, %v660_v17 }
 0x108   :  { %v370_v23 = vadd.f32 %v369_v16, %v355_v13  ;;  %451 = vst [vmem:[%s782_s2 + $0x78] sm:$0xff] %v435_v20  ;;  %v433_v26 = vsel %vm401_vm15, %v264_v59, %v417_v22  ;;  %v359_v34 = vmul.f32 %v664_v24, %v664_v24  ;;  %v360_v36 = vmul.f32 %v698_v50, %v698_v50 }
 0x109   :  { %v335_v25 = vadd.f32 %v334_v18, %v667_v28  ;;  %449 = vst [vmem:[%s782_s2 + $0x68] sm:$0xff] %v433_v26  ;;  %v361_v40 = vmul.f32 %v264_v59, %v264_v59  ;;  %s591_s2 = smov [#allocation3]   ;;  %vm385_vm0 = vcmask 1040384  }
 0x10a   :  { %v371_v27 = vadd.f32 %v370_v23, %v356_v7  ;;  %s460_s18 = sshll.u32 %s591_s2, 4  ;;  %s461_s18 = int_to_ptr.vmem [resolvable:$true] %s460_s18 }
 0x10b   :  { %v336_v29 = vadd.f32 %v660_v17, %v335_v25  ;;  %v362_v17 = vmul.f32 %v692_v46, %v692_v46  ;;  %s567_s19 = scalar_lea.vmem %s461_s18, 32  ;;  %p572_p1 = scmp.lt.s32.totalorder %s461_s18, %s461_s18 }
 0x10c   :  { %v372_v32 = vadd.f32 %v371_v27, %v357_v30  ;;  %p568_p0 = scmp.ne.s32.totalorder %s461_s18, %s567_s19  ;;  %p573_p2 = scmp.lt.s32.totalorder %s567_s19, %s567_s19 }
 0x10d   :  { %v337_v33 = vadd.f32 %v664_v24, %v336_v29  ;;  %v363_v24 = vmul.f32 %v700_v55, %v700_v55 }
 0x10e   :  { %v373_v35 = vadd.f32 %v372_v32, %v358_v31  ;;  %p574_p3 = por %p573_p2, %p572_p1 }
 0x10f   :  { %v338_v37 = vadd.f32 %v337_v33, %v698_v50 }
 0x110   :  { %v374_v38 = vadd.f32 %v373_v35, %v359_v34  ;;  %p575_p4 = pnand %p574_p3, %p568_p0 }
 0x111   :  { %v339_v28 = vadd.f32 %v338_v37, %v264_v59 }
 0x112   :  { %v375_v41 = vadd.f32 %v374_v38, %v360_v36 }
 0x113   :  { %v340_v39 = vadd.f32 %v692_v46, %v339_v28 }
 0x114   :  { %v376_v43 = vadd.f32 %v375_v41, %v361_v40 }
 0x115   :  { %v341_v42 = vadd.f32 %v700_v55, %v340_v39 }
 0x116   :  { %v377_v45 = vadd.f32 %v376_v43, %v362_v17 }
 0x117   :  { %v342_v44 = vrot.slane %v341_v42, 4 }
 0x118   :  { %v378_v47 = vadd.f32 %v377_v45, %v363_v24 }
 0x119   :  { %v343_v48 = vadd.f32 %v342_v44, %v341_v42 }
 0x11a   :  { %v379_v50 = vrot.slane %v378_v47, 4 }
 0x11b   :  { %v344_v49 = vrot.slane %v343_v48, 2 }
 0x11c   :  { %v380_v52 = vadd.f32 %v379_v50, %v378_v47 }
 0x11d   :  { %v345_v51 = vadd.f32 %v344_v49, %v343_v48 }
 0x11e   :  { %v381_v53 = vrot.slane %v380_v52, 2 }
 0x11f   :  { %v346_v54 = vrot.slane %v345_v51, 1 }
 0x120   :  { %v382_v56 = vadd.f32 %v381_v53, %v380_v52 }
 0x121   :  { %v347_v46 = vadd.f32 %v346_v54, %v345_v51 }
 0x122   :  { %v383_v57 = vrot.slane %v382_v56, 1 }
 0x124   :  { %v384_v58 = vadd.f32 %v383_v57, %v382_v56 }
 0x126   :  { %v386_v59 = vsel %vm385_vm0, %v347_v46, %v384_v58 }
 0x127   :  { %387 = vst [vmem:[#allocation3] sm:$0x3] %v386_v59 }
 0x128   :  { %578 = shalt.err (!%p575_p4)
}
 0x129   :  { %s579_s22 = scalar_lea.hbm %s783_s3, 32 }
 0x12a   :  { %p580_p5 = scmp.ne.s32.totalorder %s783_s3, %s579_s22  ;;  %p583_p6 = scmp.lt.u32.totalorder %s579_s22, %s783_s3 }
 0x12c   :  { %p585_p7 = pnand %p583_p6, %p580_p5 }
 0x12e   :  { %588 = shalt.err (!%p585_p7)
}
 0x12f   :  { %463 = dma.vmem_to_hbm [thread:$0]  %s461_s18, 32, %s783_s3, [#allocation4]  }
 0x130   :  { %589 = dma.done.wait [#allocation4], 32  }
 0x131   :  { %590 = vsyncadd [#allocation4], 4294967264 }
 0x132   :  { %469 = vsyncpa [#allocation4], 1 }

// kernel: encoder_forward.7
= control target key start
LH: loop header
LB: loop body
LE: loop exit
PB: predicated region body
PF: predicated region fallthrough
CT: control target
= control target key end

     0   :  { %vm480_vm0 = vcmask 1040384   ;;  %s844_s1 = inlined_call_operand.vmem [shape: bf16[256,128], index: 1, kind: input, shape index: {}]   ;;  %s845_s0 = inlined_call_operand.vmem [shape: bf16[128,256], index: 0, kind: input, shape index: {}]   ;;  %s846_s2 = inlined_call_operand.vmem [shape: f32[128,128], index: 2, kind: output, shape index: {0}]   ;;  %s847_s3 = inlined_call_operand.vmem [shape: f32[1,2,128], index: 3, kind: output, shape index: {1}]  }
   0x1   :  { %v619_v0 = vld [vmem:[%s844_s1 + $0x40] sm:$0xff]   ;;  %v621_v2 = vld [vmem:[%s844_s1 + $0x48] sm:$0xff]   ;;  %v623_v4 = vld [vmem:[%s844_s1 + $0x50] sm:$0xff]  }
   0x2   :  { %v620_v1 = vld [vmem:[%s844_s1] sm:$0xff]   ;;  %539 = vmatprep.subr.bf16.mxu0 %v619_v0  ;;  %603 = vmatprep.subr.bf16.mxu1 %v619_v0  ;;  %v622_v3 = vld [vmem:[%s844_s1 + $0x8] sm:$0xff]   ;;  %v624_v5 = vld [vmem:[%s844_s1 + $0x10] sm:$0xff]  }
   0x3   :  { %540 = vmatpush3.bf16.msra.mxu0 %v620_v1  ;;  %611 = vmatpush3.bf16.msra.mxu1 %v620_v1  ;;  %v625_v6 = vld [vmem:[%s844_s1 + $0x58] sm:$0xff]   ;;  %v627_v8 = vld [vmem:[%s844_s1 + $0x60] sm:$0xff]   ;;  %v629_v10 = vld [vmem:[%s844_s1 + $0x68] sm:$0xff]  }
   0x4   :  { %541 = vmatprep.subr.bf16.mxu0 %v621_v2  ;;  %604 = vmatprep.subr.bf16.mxu1 %v621_v2  ;;  %v626_v7 = vld [vmem:[%s844_s1 + $0x18] sm:$0xff]   ;;  %v628_v9 = vld [vmem:[%s844_s1 + $0x20] sm:$0xff]   ;;  %v630_v12 = vld [vmem:[%s844_s1 + $0x28] sm:$0xff]  }
   0x5   :  { %v637_v11 = vld [vmem:[%s845_s0 + $0x4] ss:$8 sps:$4 sm:$0xff]   ;;  %v631_v14 = vld [vmem:[%s844_s1 + $0x70] sm:$0xff]   ;;  %v633_v16 = vld [vmem:[%s844_s1 + $0x78] sm:$0xff]  }
   0x6   :  { %v643_v13 = vld [vmem:[%s845_s0 + $0x44] ss:$8 sps:$4 sm:$0xff]   ;;  %306 = vmatprep.mubr.bf16.mxu0 %v637_v11  ;;  %v632_v15 = vld [vmem:[%s844_s1 + $0x30] sm:$0xff]   ;;  %v634_v17 = vld [vmem:[%s844_s1 + $0x38] sm:$0xff]  }
   0x7   :  { %542 = vmatpush3.bf16.msra.mxu0 %v622_v3  ;;  %612 = vmatpush3.bf16.msra.mxu1 %v622_v3  ;;  %v635_v18 = vld [vmem:[%s845_s0] ss:$8 sps:$4 sm:$0xff]   ;;  %v638_v20 = vld [vmem:[%s845_s0 + $0x14] ss:$8 sps:$4 sm:$0xff]   ;;  %v640_v22 = vld [vmem:[%s845_s0 + $0x10] ss:$8 sps:$4 sm:$0xff]  }
   0x8   :  { %543 = vmatprep.subr.bf16.mxu0 %v623_v4  ;;  %605 = vmatprep.subr.bf16.mxu1 %v623_v4  ;;  %v641_v19 = vld [vmem:[%s845_s0 + $0x40] ss:$8 sps:$4 sm:$0xff]   ;;  %v647_v21 = vld [vmem:[%s845_s0 + $0x54] ss:$8 sps:$4 sm:$0xff]   ;;  %v649_v23 = vld [vmem:[%s845_s0 + $0x50] ss:$8 sps:$4 sm:$0xff]  }
   0x9   :  { %338 = vmatprep.mubr.bf16.mxu1 %v643_v13  ;;  %v644_v24 = vld [vmem:[%s845_s0 + $0x24] ss:$8 sps:$4 sm:$0xff]   ;;  %v646_v26 = vld [vmem:[%s845_s0 + $0x20] ss:$8 sps:$4 sm:$0xff]   ;;  %v650_v28 = vld [vmem:[%s845_s0 + $0x34] ss:$8 sps:$4 sm:$0xff]  }
   0xa   :  { %v653_v25 = vld [vmem:[%s845_s0 + $0x64] ss:$8 sps:$4 sm:$0xff]   ;;  %v655_v27 = vld [vmem:[%s845_s0 + $0x60] ss:$8 sps:$4 sm:$0xff]   ;;  %v656_v29 = vld [vmem:[%s845_s0 + $0x74] ss:$8 sps:$4 sm:$0xff]  }
   0xb   :  { %544 = vmatpush3.bf16.msra.mxu0 %v624_v5  ;;  %613 = vmatpush3.bf16.msra.mxu1 %v624_v5  ;;  %v652_v30 = vld [vmem:[%s845_s0 + $0x30] ss:$8 sps:$4 sm:$0xff]  }
   0xc   :  { %545 = vmatprep.subr.bf16.mxu0 %v625_v6  ;;  %606 = vmatprep.subr.bf16.mxu1 %v625_v6  ;;  %v658_v31 = vld [vmem:[%s845_s0 + $0x70] ss:$8 sps:$4 sm:$0xff]  }
   0xf   :  { %546 = vmatpush3.bf16.msra.mxu0 %v626_v7  ;;  %614 = vmatpush3.bf16.msra.mxu1 %v626_v7 }
  0x10   :  { %547 = vmatprep.subr.bf16.mxu0 %v627_v8  ;;  %607 = vmatprep.subr.bf16.mxu1 %v627_v8 }
  0x13   :  { %548 = vmatpush3.bf16.msra.mxu0 %v628_v9  ;;  %615 = vmatpush3.bf16.msra.mxu1 %v628_v9 }
  0x14   :  { %549 = vmatprep.subr.bf16.mxu0 %v629_v10  ;;  %608 = vmatprep.subr.bf16.mxu1 %v629_v10 }
  0x17   :  { %550 = vmatpush3.bf16.msra.mxu0 %v630_v12  ;;  %616 = vmatpush3.bf16.msra.mxu1 %v630_v12 }
  0x18   :  { %551 = vmatprep.subr.bf16.mxu0 %v631_v14  ;;  %609 = vmatprep.subr.bf16.mxu1 %v631_v14 }
  0x1b   :  { %552 = vmatpush3.bf16.msra.mxu0 %v632_v15  ;;  %617 = vmatpush3.bf16.msra.mxu1 %v632_v15 }
  0x1c   :  { %553 = vmatprep.subr.bf16.mxu0 %v633_v16  ;;  %610 = vmatprep.subr.bf16.mxu1 %v633_v16 }
  0x1f   :  { %554 = vmatpush3.bf16.msra.mxu0 %v634_v17  ;;  %618 = vmatpush3.bf16.msra.mxu1 %v634_v17 }
  0x22   :  { %307 = vmatmul.mubr.bf16.vlgmr.msra.gmra.mrb[0].mxu0 %v635_v18  ;;  %339 = vmatmul.mubr.bf16.vlgmr.msra.gmra.mrb[0].mxu1 %v641_v19 }
  0x23   :  { %314 = vmatprep.mubr.bf16.mxu0 %v638_v20  ;;  %346 = vmatprep.mubr.bf16.mxu1 %v647_v21 }
  0x2a   :  { %315 = vmatmul.mubr.bf16.gmra.mrb[4].mxu0 %v640_v22  ;;  %347 = vmatmul.mubr.bf16.gmra.mrb[4].mxu1 %v649_v23 }
  0x2b   :  { %322 = vmatprep.mubr.bf16.mxu0 %v644_v24  ;;  %354 = vmatprep.mubr.bf16.mxu1 %v653_v25 }
  0x32   :  { %323 = vmatmul.mubr.bf16.gmra.mrb[8].mxu0 %v646_v26  ;;  %355 = vmatmul.mubr.bf16.gmra.mrb[8].mxu1 %v655_v27 }
  0x33   :  { %330 = vmatprep.mubr.bf16.mxu0 %v650_v28  ;;  %362 = vmatprep.mubr.bf16.mxu1 %v656_v29 }
  0x3a   :  { %331 = vmatmul.mubr.bf16.gmra.mrb[12].mxu0 %v652_v30  ;;  %363 = vmatmul.mubr.bf16.gmra.mrb[12].mxu1 %v658_v31 }
  0xf5   :  { %v555_v32 = vpop.f32.mrb[0].mxu0  ;;  %v579_v33 = vpop.f32.mrb[0].mxu1 }
  0xf6   :  { %v556_v34 = vpop.f32.mrb[1].mxu0  ;;  %v580_v35 = vpop.f32.mrb[1].mxu1 }
  0xf7   :  { %v557_v36 = vadd.f32 %v556_v34, %v555_v32  ;;  %v558_v37 = vpop.f32.mrb[2].mxu0  ;;  %v775_v38 = vadd.f32 %v580_v35, %v579_v33  ;;  %v582_v39 = vpop.f32.mrb[2].mxu1 }
  0xf8   :  { %v559_v40 = vpop.f32.mrb[3].mxu0  ;;  %v583_v41 = vpop.f32.mrb[3].mxu1 }
  0xf9   :  { %483 = vst [vmem:[%s846_s2] sm:$0xff] %v557_v36  ;;  %v560_v42 = vadd.f32 %v559_v40, %v558_v37  ;;  %491 = vst [vmem:[%s846_s2 + $0x40] sm:$0xff] %v775_v38  ;;  %v784_v43 = vadd.f32 %v583_v41, %v582_v39  ;;  %v443_v44 = vmul.f32 %v557_v36, %v557_v36 }
  0xfa   :  { %v451_v37 = vmul.f32 %v775_v38, %v775_v38 }
  0xfb   :  { %v422_v45 = vadd.f32 %v560_v42, %v557_v36  ;;  %v444_v46 = vmul.f32 %v560_v42, %v560_v42  ;;  %484 = vst [vmem:[%s846_s2 + $0x8] sm:$0xff] %v560_v42  ;;  %492 = vst [vmem:[%s846_s2 + $0x48] sm:$0xff] %v784_v43  ;;  %v452_v41 = vmul.f32 %v784_v43, %v784_v43 }
  0xfd   :  { %v459_v47 = vadd.f32 %v444_v46, %v443_v44  ;;  %v561_v48 = vpop.f32.mrb[4].mxu0  ;;  %v585_v49 = vpop.f32.mrb[4].mxu1 }
  0xfe   :  { %v562_v50 = vpop.f32.mrb[5].mxu0  ;;  %v586_v51 = vpop.f32.mrb[5].mxu1 }
  0xff   :  { %v563_v52 = vadd.f32 %v562_v50, %v561_v48  ;;  %v564_v53 = vpop.f32.mrb[6].mxu0  ;;  %v793_v54 = vadd.f32 %v586_v51, %v585_v49  ;;  %v588_v55 = vpop.f32.mrb[6].mxu1 }
 0x100   :  { %v565_v56 = vpop.f32.mrb[7].mxu0  ;;  %v589_v57 = vpop.f32.mrb[7].mxu1 }
 0x101   :  { %v423_v58 = vadd.f32 %v563_v52, %v422_v45  ;;  %v445_v59 = vmul.f32 %v563_v52, %v563_v52  ;;  %485 = vst [vmem:[%s846_s2 + $0x10] sm:$0xff] %v563_v52  ;;  %v566_v60 = vadd.f32 %v565_v56, %v564_v53  ;;  %493 = vst [vmem:[%s846_s2 + $0x50] sm:$0xff] %v793_v54 }
 0x102   :  { %v590_v61 = vadd.f32 %v589_v57, %v588_v55  ;;  %v453_v45 = vmul.f32 %v793_v54, %v793_v54 }
 0x103   :  { %v460_v62 = vadd.f32 %v459_v47, %v445_v59  ;;  %v424_v63 = vadd.f32 %v566_v60, %v423_v58  ;;  %v446_v0 = vmul.f32 %v566_v60, %v566_v60  ;;  %486 = vst [vmem:[%s846_s2 + $0x18] sm:$0xff] %v566_v60 }
 0x104   :  { %494 = vst [vmem:[%s846_s2 + $0x58] sm:$0xff] %v590_v61  ;;  %v454_v48 = vmul.f32 %v590_v61, %v590_v61 }
 0x105   :  { %v461_v1 = vadd.f32 %v460_v62, %v446_v0  ;;  %v567_v2 = vpop.f32.mrb[8].mxu0  ;;  %v591_v3 = vpop.f32.mrb[8].mxu1 }
 0x106   :  { %v568_v4 = vpop.f32.mrb[9].mxu0  ;;  %v592_v5 = vpop.f32.mrb[9].mxu1 }
 0x107   :  { %v569_v6 = vadd.f32 %v568_v4, %v567_v2  ;;  %v570_v7 = vpop.f32.mrb[10].mxu0  ;;  %v593_v8 = vadd.f32 %v592_v5, %v591_v3  ;;  %v594_v9 = vpop.f32.mrb[10].mxu1 }
 0x108   :  { %v571_v10 = vpop.f32.mrb[11].mxu0  ;;  %v595_v11 = vpop.f32.mrb[11].mxu1 }
 0x109   :  { %v425_v12 = vadd.f32 %v569_v6, %v424_v63  ;;  %v447_v13 = vmul.f32 %v569_v6, %v569_v6  ;;  %487 = vst [vmem:[%s846_s2 + $0x20] sm:$0xff] %v569_v6  ;;  %v572_v14 = vadd.f32 %v571_v10, %v570_v7  ;;  %495 = vst [vmem:[%s846_s2 + $0x60] sm:$0xff] %v593_v8 }
 0x10a   :  { %v596_v15 = vadd.f32 %v595_v11, %v594_v9  ;;  %v455_v52 = vmul.f32 %v593_v8, %v593_v8 }
 0x10b   :  { %v462_v16 = vadd.f32 %v461_v1, %v447_v13  ;;  %v426_v17 = vadd.f32 %v572_v14, %v425_v12  ;;  %v448_v18 = vmul.f32 %v572_v14, %v572_v14  ;;  %488 = vst [vmem:[%s846_s2 + $0x28] sm:$0xff] %v572_v14 }
 0x10c   :  { %496 = vst [vmem:[%s846_s2 + $0x68] sm:$0xff] %v596_v15  ;;  %v456_v56 = vmul.f32 %v596_v15, %v596_v15 }
 0x10d   :  { %v463_v19 = vadd.f32 %v462_v16, %v448_v18  ;;  %v573_v20 = vpop.f32.mrb[12].mxu0  ;;  %v597_v21 = vpop.f32.mrb[12].mxu1 }
 0x10e   :  { %v574_v22 = vpop.f32.mrb[13].mxu0  ;;  %v598_v23 = vpop.f32.mrb[13].mxu1 }
 0x10f   :  { %v575_v24 = vadd.f32 %v574_v22, %v573_v20  ;;  %v576_v25 = vpop.f32.mrb[14].mxu0  ;;  %v599_v26 = vadd.f32 %v598_v23, %v597_v21  ;;  %v600_v27 = vpop.f32.mrb[14].mxu1 }
 0x110   :  { %v577_v28 = vpop.f32.mrb[15].mxu0  ;;  %v601_v29 = vpop.f32.mrb[15].mxu1 }
 0x111   :  { %v427_v30 = vadd.f32 %v575_v24, %v426_v17  ;;  %v449_v31 = vmul.f32 %v575_v24, %v575_v24  ;;  %489 = vst [vmem:[%s846_s2 + $0x30] sm:$0xff] %v575_v24  ;;  %v578_v32 = vadd.f32 %v577_v28, %v576_v25  ;;  %497 = vst [vmem:[%s846_s2 + $0x70] sm:$0xff] %v599_v26 }
 0x112   :  { %v602_v33 = vadd.f32 %v601_v29, %v600_v27  ;;  %v457_v57 = vmul.f32 %v599_v26, %v599_v26 }
 0x113   :  { %v464_v34 = vadd.f32 %v463_v19, %v449_v31  ;;  %v428_v35 = vadd.f32 %v578_v32, %v427_v30  ;;  %v450_v36 = vmul.f32 %v578_v32, %v578_v32  ;;  %490 = vst [vmem:[%s846_s2 + $0x38] sm:$0xff] %v578_v32 }
 0x114   :  { %498 = vst [vmem:[%s846_s2 + $0x78] sm:$0xff] %v602_v33  ;;  %v458_v62 = vmul.f32 %v602_v33, %v602_v33 }
 0x115   :  { %v429_v39 = vadd.f32 %v775_v38, %v428_v35  ;;  %v465_v40 = vadd.f32 %v464_v34, %v450_v36 }
 0x117   :  { %v430_v42 = vadd.f32 %v784_v43, %v429_v39  ;;  %v466_v44 = vadd.f32 %v465_v40, %v451_v37 }
 0x119   :  { %v467_v46 = vadd.f32 %v466_v44, %v452_v41  ;;  %v431_v47 = vadd.f32 %v793_v54, %v430_v42 }
 0x11b   :  { %v432_v49 = vadd.f32 %v590_v61, %v431_v47  ;;  %v468_v50 = vadd.f32 %v467_v46, %v453_v45 }
 0x11d   :  { %v433_v51 = vadd.f32 %v593_v8, %v432_v49  ;;  %v469_v53 = vadd.f32 %v468_v50, %v454_v48 }
 0x11f   :  { %v470_v38 = vadd.f32 %v469_v53, %v455_v52  ;;  %v434_v55 = vadd.f32 %v596_v15, %v433_v51 }
 0x121   :  { %v471_v58 = vadd.f32 %v470_v38, %v456_v56  ;;  %v435_v59 = vadd.f32 %v599_v26, %v434_v55 }
 0x123   :  { %v472_v43 = vadd.f32 %v471_v58, %v457_v57  ;;  %v436_v60 = vadd.f32 %v602_v33, %v435_v59 }
 0x125   :  { %v437_v63 = vrot.slane %v436_v60, 4  ;;  %v473_v0 = vadd.f32 %v472_v43, %v458_v62 }
 0x127   :  { %v438_v1 = vadd.f32 %v437_v63, %v436_v60  ;;  %v474_v2 = vrot.slane %v473_v0, 4 }
 0x129   :  { %v439_v54 = vrot.slane %v438_v1, 2  ;;  %v475_v3 = vadd.f32 %v474_v2, %v473_v0 }
 0x12b   :  { %v440_v61 = vadd.f32 %v439_v54, %v438_v1  ;;  %v476_v4 = vrot.slane %v475_v3, 2 }
 0x12d   :  { %v441_v5 = vrot.slane %v440_v61, 1  ;;  %v477_v6 = vadd.f32 %v476_v4, %v475_v3 }
 0x12f   :  { %v478_v7 = vrot.slane %v477_v6, 1  ;;  %v442_v8 = vadd.f32 %v441_v5, %v440_v61 }
 0x131   :  { %v479_v9 = vadd.f32 %v478_v7, %v477_v6 }
 0x133   :  { %v481_v10 = vsel %vm480_vm0, %v442_v8, %v479_v9 }
 0x134   :  { %482 = vst [vmem:[%s847_s3] sm:$0x3] %v481_v10 }

// kernel: encoder_forward.8
= control target key start
LH: loop header
LB: loop body
LE: loop exit
PB: predicated region body
PF: predicated region fallthrough
CT: control target
= control target key end

     0   :  { %s305_s0 = inlined_call_operand.vmem [shape: f32[128,128], index: 0, kind: input, shape index: {}]   ;;  %s306_s1 = inlined_call_operand.vmem [shape: f32[1,128], index: 1, kind: input, shape index: {}]   ;;  %s307_s2 = inlined_call_operand.vmem [shape: f32[1,128], index: 2, kind: input, shape index: {}]   ;;  %s308_s3 = inlined_call_operand.vmem [shape: f32[128,128], index: 3, kind: output, shape index: {}]  }
   0x1   :  { %v14_v0 = vld [vmem:[%s305_s0] sm:$0xff]  ;;  %v15_v4 = vld [vmem:[%s305_s0 + $0x8] sm:$0xff]  ;;  %v16_v5 = vld [vmem:[%s305_s0 + $0x10] sm:$0xff] }
   0x2   :  { %v172_v1 = vld [vmem:[%s306_s1] ss:$0 sm:$0xff]  ;;  %v17_v6 = vld [vmem:[%s305_s0 + $0x18] sm:$0xff]  ;;  %v19_v11 = vld [vmem:[%s305_s0 + $0x28] sm:$0xff] }
   0x3   :  { %v177_v2 = vld [vmem:[%s307_s2] ss:$0 sm:$0xff]  ;;  %v37_v3 = vmul.f32 %v172_v1, %v14_v0  ;;  %v38_v7 = vmul.f32 %v172_v1, %v15_v4  ;;  %v39_v8 = vmul.f32 %v172_v1, %v16_v5  ;;  %v40_v9 = vmul.f32 %v172_v1, %v17_v6  ;;  %v20_v12 = vld [vmem:[%s305_s0 + $0x30] sm:$0xff]  ;;  %v21_v17 = vld [vmem:[%s305_s0 + $0x38] sm:$0xff] }
   0x4   :  { %v18_v10 = vld [vmem:[%s305_s0 + $0x20] sm:$0xff]  ;;  %v42_v15 = vmul.f32 %v172_v1, %v19_v11  ;;  %v43_v16 = vmul.f32 %v172_v1, %v20_v12  ;;  %v44_v21 = vmul.f32 %v172_v1, %v21_v17  ;;  %v23_v30 = vld [vmem:[%s305_s0 + $0x48] sm:$0xff]  ;;  %v24_v31 = vld [vmem:[%s305_s0 + $0x50] sm:$0xff] }
   0x5   :  { %v60_v13 = vadd.f32 %v177_v2, %v37_v3  ;;  %v41_v14 = vmul.f32 %v172_v1, %v18_v10  ;;  %v61_v18 = vadd.f32 %v177_v2, %v38_v7  ;;  %v62_v19 = vadd.f32 %v177_v2, %v39_v8  ;;  %v22_v25 = vld [vmem:[%s305_s0 + $0x40] sm:$0xff]  ;;  %v25_v43 = vld [vmem:[%s305_s0 + $0x58] sm:$0xff]  ;;  %v27_v45 = vld [vmem:[%s305_s0 + $0x68] sm:$0xff] }
   0x6   :  { %v63_v20 = vadd.f32 %v177_v2, %v40_v9  ;;  %v65_v24 = vadd.f32 %v177_v2, %v42_v15  ;;  %v66_v37 = vadd.f32 %v177_v2, %v43_v16  ;;  %v67_v38 = vadd.f32 %v177_v2, %v44_v21  ;;  %v26_v44 = vld [vmem:[%s305_s0 + $0x60] sm:$0xff]  ;;  %v28_v56 = vld [vmem:[%s305_s0 + $0x70] sm:$0xff]  ;;  %v29_v4 = vld [vmem:[%s305_s0 + $0x78] sm:$0xff] }
   0x7   :  { %vm76_vm0 = vcmp.ge.f32.partialorder %v60_v13, 0.0  ;;  %v92_v22 = vmul.f32 0.2, %v60_v13  ;;  %v64_v23 = vadd.f32 %v177_v2, %v41_v14  ;;  %vm77_vm1 = vcmp.ge.f32.partialorder %v61_v18, 0.0 }
   0x8   :  { %v93_v26 = vmul.f32 0.2, %v61_v18  ;;  %vm78_vm2 = vcmp.ge.f32.partialorder %v62_v19, 0.0  ;;  %v94_v27 = vmul.f32 0.2, %v62_v19  ;;  %vm79_vm3 = vcmp.ge.f32.partialorder %v63_v20, 0.0 }
   0x9   :  { %v108_v28 = vsel %vm76_vm0, %v60_v13, %v92_v22  ;;  %v95_v29 = vmul.f32 0.2, %v63_v20  ;;  %vm80_vm4 = vcmp.ge.f32.partialorder %v64_v23, 0.0  ;;  %v96_v34 = vmul.f32 0.2, %v64_v23 }
   0xa   :  { %124 = vst [vmem:[%s308_s3] sm:$0xff] %v108_v28  ;;  %v109_v32 = vsel %vm77_vm1, %v61_v18, %v93_v26  ;;  %v110_v33 = vsel %vm78_vm2, %v62_v19, %v94_v27  ;;  %vm81_vm5 = vcmp.ge.f32.partialorder %v65_v24, 0.0  ;;  %v97_v36 = vmul.f32 0.2, %v65_v24 }
   0xb   :  { %125 = vst [vmem:[%s308_s3 + $0x8] sm:$0xff] %v109_v32  ;;  %126 = vst [vmem:[%s308_s3 + $0x10] sm:$0xff] %v110_v33  ;;  %v111_v35 = vsel %vm79_vm3, %v63_v20, %v95_v29  ;;  %v112_v39 = vsel %vm80_vm4, %v64_v23, %v96_v34  ;;  %v45_v40 = vmul.f32 %v172_v1, %v22_v25  ;;  %vm82_vm6 = vcmp.ge.f32.partialorder %v66_v37, 0.0 }
   0xc   :  { %127 = vst [vmem:[%s308_s3 + $0x18] sm:$0xff] %v111_v35  ;;  %v46_v41 = vmul.f32 %v172_v1, %v23_v30  ;;  %v47_v42 = vmul.f32 %v172_v1, %v24_v31  ;;  %128 = vst [vmem:[%s308_s3 + $0x20] sm:$0xff] %v112_v39  ;;  %v113_v46 = vsel %vm81_vm5, %v65_v24, %v97_v36  ;;  %v98_v47 = vmul.f32 0.2, %v66_v37 }
   0xd   :  { %vm83_vm7 = vcmp.ge.f32.partialorder %v67_v38, 0.0  ;;  %129 = vst [vmem:[%s308_s3 + $0x28] sm:$0xff] %v113_v46  ;;  %v99_v48 = vmul.f32 0.2, %v67_v38  ;;  %v68_v49 = vadd.f32 %v177_v2, %v45_v40  ;;  %v48_v53 = vmul.f32 %v172_v1, %v25_v43 }
   0xe   :  { %v69_v50 = vadd.f32 %v177_v2, %v46_v41  ;;  %v70_v51 = vadd.f32 %v177_v2, %v47_v42  ;;  %v114_v52 = vsel %vm82_vm6, %v66_v37, %v98_v47  ;;  %v49_v54 = vmul.f32 %v172_v1, %v26_v44 }
   0xf   :  { %v50_v55 = vmul.f32 %v172_v1, %v27_v45  ;;  %130 = vst [vmem:[%s308_s3 + $0x30] sm:$0xff] %v114_v52  ;;  %v115_v57 = vsel %vm83_vm7, %v67_v38, %v99_v48  ;;  %vm84_vm8 = vcmp.ge.f32.partialorder %v68_v49, 0.0  ;;  %v100_v58 = vmul.f32 0.2, %v68_v49 }
  0x10   :  { %vm85_vm9 = vcmp.ge.f32.partialorder %v69_v50, 0.0  ;;  %131 = vst [vmem:[%s308_s3 + $0x38] sm:$0xff] %v115_v57  ;;  %v101_v59 = vmul.f32 0.2, %v69_v50  ;;  %vm86_vm10 = vcmp.ge.f32.partialorder %v70_v51, 0.0  ;;  %v71_v61 = vadd.f32 %v177_v2, %v48_v53 }
  0x11   :  { %v102_v60 = vmul.f32 0.2, %v70_v51  ;;  %v116_v62 = vsel %vm84_vm8, %v68_v49, %v100_v58  ;;  %v72_v63 = vadd.f32 %v177_v2, %v49_v54  ;;  %v73_v0 = vadd.f32 %v177_v2, %v50_v55 }
  0x12   :  { %v51_v3 = vmul.f32 %v172_v1, %v28_v56  ;;  %132 = vst [vmem:[%s308_s3 + $0x40] sm:$0xff] %v116_v62  ;;  %v117_v5 = vsel %vm85_vm9, %v69_v50, %v101_v59  ;;  %vm87_vm11 = vcmp.ge.f32.partialorder %v71_v61, 0.0  ;;  %v103_v7 = vmul.f32 0.2, %v71_v61 }
  0x13   :  { %v118_v6 = vsel %vm86_vm10, %v70_v51, %v102_v60  ;;  %133 = vst [vmem:[%s308_s3 + $0x48] sm:$0xff] %v117_v5  ;;  %vm88_vm12 = vcmp.ge.f32.partialorder %v72_v63, 0.0  ;;  %v104_v8 = vmul.f32 0.2, %v72_v63  ;;  %vm89_vm13 = vcmp.ge.f32.partialorder %v73_v0, 0.0 }
  0x14   :  { %134 = vst [vmem:[%s308_s3 + $0x50] sm:$0xff] %v118_v6  ;;  %v105_v9 = vmul.f32 0.2, %v73_v0  ;;  %v119_v10 = vsel %vm87_vm11, %v71_v61, %v103_v7  ;;  %v74_v11 = vadd.f32 %v177_v2, %v51_v3  ;;  %v52_v12 = vmul.f32 %v172_v1, %v29_v4 }
  0x15   :  { %135 = vst [vmem:[%s308_s3 + $0x58] sm:$0xff] %v119_v10  ;;  %v120_v13 = vsel %vm88_vm12, %v72_v63, %v104_v8 }
  0x16   :  { %v121_v14 = vsel %vm89_vm13, %v73_v0, %v105_v9  ;;  %136 = vst [vmem:[%s308_s3 + $0x60] sm:$0xff] %v120_v13  ;;  %vm90_vm14 = vcmp.ge.f32.partialorder %v74_v11, 0.0  ;;  %v106_v15 = vmul.f32 0.2, %v74_v11  ;;  %v75_v16 = vadd.f32 %v177_v2, %v52_v12 }
  0x17   :  { %137 = vst [vmem:[%s308_s3 + $0x68] sm:$0xff] %v121_v14 }
  0x18   :  { %v122_v17 = vsel %vm90_vm14, %v74_v11, %v106_v15  ;;  %vm91_vm15 = vcmp.ge.f32.partialorder %v75_v16, 0.0  ;;  %v107_v1 = vmul.f32 0.2, %v75_v16 }
  0x19   :  { %138 = vst [vmem:[%s308_s3 + $0x70] sm:$0xff] %v122_v17 }
  0x1a   :  { %v123_v18 = vsel %vm91_vm15, %v75_v16, %v107_v1 }
  0x1b   :  { %139 = vst [vmem:[%s308_s3 + $0x78] sm:$0xff] %v123_v18 }

// kernel: encoder_forward.9
= control target key start
LH: loop header
LB: loop body
LE: loop exit
PB: predicated region body
PF: predicated region fallthrough
CT: control target
= control target key end

     0   :  { %vm264_vm0 = vcmask 1040384   ;;  %s460_s1 = inlined_call_operand.vmem [shape: bf16[256,128], index: 1, kind: input, shape index: {}]   ;;  %s461_s0 = inlined_call_operand.vmem [shape: bf16[32,256], index: 0, kind: input, shape index: {}]   ;;  %s462_s2 = inlined_call_operand.vmem [shape: f32[32,128], index: 2, kind: output, shape index: {0}]   ;;  %s463_s3 = inlined_call_operand.vmem [shape: f32[1,2,128], index: 3, kind: output, shape index: {1}]  }
   0x1   :  { %v343_v0 = vld [vmem:[%s460_s1 + $0x40] sm:$0xff]   ;;  %v345_v2 = vld [vmem:[%s460_s1 + $0x48] sm:$0xff]   ;;  %v347_v4 = vld [vmem:[%s460_s1 + $0x50] sm:$0xff]  }
   0x2   :  { %v344_v1 = vld [vmem:[%s460_s1] sm:$0xff]   ;;  %299 = vmatprep.subr.bf16.mxu0 %v343_v0  ;;  %327 = vmatprep.subr.bf16.mxu1 %v343_v0  ;;  %v346_v3 = vld [vmem:[%s460_s1 + $0x8] sm:$0xff]   ;;  %v348_v5 = vld [vmem:[%s460_s1 + $0x10] sm:$0xff]  }
   0x3   :  { %300 = vmatpush3.bf16.msra.mxu0 %v344_v1  ;;  %335 = vmatpush3.bf16.msra.mxu1 %v344_v1  ;;  %v349_v6 = vld [vmem:[%s460_s1 + $0x58] sm:$0xff]   ;;  %v351_v8 = vld [vmem:[%s460_s1 + $0x60] sm:$0xff]   ;;  %v353_v10 = vld [vmem:[%s460_s1 + $0x68] sm:$0xff]  }
   0x4   :  { %301 = vmatprep.subr.bf16.mxu0 %v345_v2  ;;  %328 = vmatprep.subr.bf16.mxu1 %v345_v2  ;;  %v350_v7 = vld [vmem:[%s460_s1 + $0x18] sm:$0xff]   ;;  %v352_v9 = vld [vmem:[%s460_s1 + $0x20] sm:$0xff]   ;;  %v354_v13 = vld [vmem:[%s460_s1 + $0x28] sm:$0xff]  }
   0x5   :  { %v361_v11 = vld [vmem:[%s461_s0 + $0x4] ss:$8 sps:$4 sm:$0xff]   ;;  %v364_v12 = vld [vmem:[%s461_s0 + $0x14] ss:$8 sps:$4 sm:$0xff]   ;;  %v359_v18 = vld [vmem:[%s461_s0] ss:$8 sps:$4 sm:$0xff]  }
   0x6   :  { %v355_v14 = vld [vmem:[%s460_s1 + $0x70] sm:$0xff]   ;;  %210 = vmatprep.mubr.bf16.mxu0 %v361_v11  ;;  %218 = vmatprep.mubr.bf16.mxu1 %v364_v12  ;;  %v357_v16 = vld [vmem:[%s460_s1 + $0x78] sm:$0xff]  }
   0x7   :  { %302 = vmatpush3.bf16.msra.mxu0 %v346_v3  ;;  %336 = vmatpush3.bf16.msra.mxu1 %v346_v3  ;;  %v356_v15 = vld [vmem:[%s460_s1 + $0x30] sm:$0xff]   ;;  %v358_v17 = vld [vmem:[%s460_s1 + $0x38] sm:$0xff]  }
   0x8   :  { %303 = vmatprep.subr.bf16.mxu0 %v347_v4  ;;  %329 = vmatprep.subr.bf16.mxu1 %v347_v4  ;;  %v362_v19 = vld [vmem:[%s461_s0 + $0x10] ss:$8 sps:$4 sm:$0xff]  }
   0xb   :  { %304 = vmatpush3.bf16.msra.mxu0 %v348_v5  ;;  %337 = vmatpush3.bf16.msra.mxu1 %v348_v5 }
   0xc   :  { %305 = vmatprep.subr.bf16.mxu0 %v349_v6  ;;  %330 = vmatprep.subr.bf16.mxu1 %v349_v6 }
   0xf   :  { %306 = vmatpush3.bf16.msra.mxu0 %v350_v7  ;;  %338 = vmatpush3.bf16.msra.mxu1 %v350_v7 }
  0x10   :  { %307 = vmatprep.subr.bf16.mxu0 %v351_v8  ;;  %331 = vmatprep.subr.bf16.mxu1 %v351_v8 }
  0x13   :  { %308 = vmatpush3.bf16.msra.mxu0 %v352_v9  ;;  %339 = vmatpush3.bf16.msra.mxu1 %v352_v9 }
  0x14   :  { %309 = vmatprep.subr.bf16.mxu0 %v353_v10  ;;  %332 = vmatprep.subr.bf16.mxu1 %v353_v10 }
  0x17   :  { %310 = vmatpush3.bf16.msra.mxu0 %v354_v13  ;;  %340 = vmatpush3.bf16.msra.mxu1 %v354_v13 }
  0x18   :  { %311 = vmatprep.subr.bf16.mxu0 %v355_v14  ;;  %333 = vmatprep.subr.bf16.mxu1 %v355_v14 }
  0x1b   :  { %312 = vmatpush3.bf16.msra.mxu0 %v356_v15  ;;  %341 = vmatpush3.bf16.msra.mxu1 %v356_v15 }
  0x1c   :  { %313 = vmatprep.subr.bf16.mxu0 %v357_v16  ;;  %334 = vmatprep.subr.bf16.mxu1 %v357_v16 }
  0x1f   :  { %314 = vmatpush3.bf16.msra.mxu0 %v358_v17  ;;  %342 = vmatpush3.bf16.msra.mxu1 %v358_v17 }
  0x22   :  { %211 = vmatmul.mubr.bf16.vlgmr.msra.gmra.mrb[0].mxu0 %v359_v18  ;;  %219 = vmatmul.mubr.bf16.vlgmr.msra.gmra.mrb[0].mxu1 %v362_v19 }
  0xf5   :  { %v315_v20 = vpop.f32.mrb[0].mxu0  ;;  %v321_v21 = vpop.f32.mrb[0].mxu1 }
  0xf6   :  { %v316_v22 = vpop.f32.mrb[1].mxu0  ;;  %v322_v23 = vpop.f32.mrb[1].mxu1 }
  0xf7   :  { %v317_v24 = vadd.f32 %v316_v22, %v315_v20  ;;  %v318_v25 = vpop.f32.mrb[2].mxu0  ;;  %v323_v26 = vadd.f32 %v322_v23, %v321_v21  ;;  %v324_v27 = vpop.f32.mrb[2].mxu1 }
  0xf8   :  { %v319_v28 = vpop.f32.mrb[3].mxu0  ;;  %v325_v29 = vpop.f32.mrb[3].mxu1 }
  0xf9   :  { %267 = vst [vmem:[%s462_s2] sm:$0xff] %v317_v24  ;;  %269 = vst [vmem:[%s462_s2 + $0x10] sm:$0xff] %v323_v26  ;;  %v320_v30 = vadd.f32 %v319_v28, %v318_v25  ;;  %v326_v31 = vadd.f32 %v325_v29, %v324_v27  ;;  %v251_v32 = vmul.f32 %v317_v24, %v317_v24 }
  0xfa   :  { %v253_v33 = vmul.f32 %v323_v26, %v323_v26 }
  0xfb   :  { %v242_v34 = vadd.f32 %v320_v30, %v317_v24  ;;  %v252_v35 = vmul.f32 %v320_v30, %v320_v30  ;;  %268 = vst [vmem:[%s462_s2 + $0x8] sm:$0xff] %v320_v30  ;;  %270 = vst [vmem:[%s462_s2 + $0x18] sm:$0xff] %v326_v31  ;;  %v254_v39 = vmul.f32 %v326_v31, %v326_v31 }
  0xfd   :  { %v255_v36 = vadd.f32 %v252_v35, %v251_v32  ;;  %v243_v37 = vadd.f32 %v323_v26, %v242_v34 }
  0xff   :  { %v244_v38 = vadd.f32 %v326_v31, %v243_v37  ;;  %v256_v40 = vadd.f32 %v255_v36, %v253_v33 }
 0x101   :  { %v245_v41 = vrot.slane %v244_v38, 4  ;;  %v257_v42 = vadd.f32 %v256_v40, %v254_v39 }
 0x103   :  { %v246_v43 = vadd.f32 %v245_v41, %v244_v38  ;;  %v258_v44 = vrot.slane %v257_v42, 4 }
 0x105   :  { %v247_v45 = vrot.slane %v246_v43, 2  ;;  %v259_v46 = vadd.f32 %v258_v44, %v257_v42 }
 0x107   :  { %v248_v47 = vadd.f32 %v247_v45, %v246_v43  ;;  %v260_v48 = vrot.slane %v259_v46, 2 }
 0x109   :  { %v249_v49 = vrot.slane %v248_v47, 1  ;;  %v261_v50 = vadd.f32 %v260_v48, %v259_v46 }
 0x10b   :  { %v262_v51 = vrot.slane %v261_v50, 1  ;;  %v250_v52 = vadd.f32 %v249_v49, %v248_v47 }
 0x10d   :  { %v263_v53 = vadd.f32 %v262_v51, %v261_v50 }
 0x10f   :  { %v265_v54 = vsel %vm264_vm0, %v250_v52, %v263_v53 }
 0x110   :  { %266 = vst [vmem:[%s463_s3] sm:$0x3] %v265_v54 }

// kernel: encoder_forward.10
= control target key start
LH: loop header
LB: loop body
LE: loop exit
PB: predicated region body
PF: predicated region fallthrough
CT: control target
= control target key end

     0   :  { %s112_s0 = inlined_call_operand.vmem [shape: f32[32,128], index: 0, kind: input, shape index: {}]   ;;  %s113_s1 = inlined_call_operand.vmem [shape: f32[1,128], index: 1, kind: input, shape index: {}]   ;;  %s114_s2 = inlined_call_operand.vmem [shape: f32[1,128], index: 2, kind: input, shape index: {}]   ;;  %s115_s3 = inlined_call_operand.vmem [shape: f32[32,128], index: 3, kind: output, shape index: {}]  }
   0x1   :  { %v14_v0 = vld [vmem:[%s112_s0] sm:$0xff]  ;;  %v15_v4 = vld [vmem:[%s112_s0 + $0x8] sm:$0xff]  ;;  %v16_v5 = vld [vmem:[%s112_s0 + $0x10] sm:$0xff] }
   0x2   :  { %v60_v1 = vld [vmem:[%s113_s1] ss:$0 sm:$0xff]  ;;  %v17_v6 = vld [vmem:[%s112_s0 + $0x18] sm:$0xff] }
   0x3   :  { %v61_v2 = vld [vmem:[%s114_s2] ss:$0 sm:$0xff]  ;;  %v25_v3 = vmul.f32 %v60_v1, %v14_v0  ;;  %v26_v7 = vmul.f32 %v60_v1, %v15_v4  ;;  %v27_v8 = vmul.f32 %v60_v1, %v16_v5  ;;  %v28_v9 = vmul.f32 %v60_v1, %v17_v6 }
   0x5   :  { %v36_v10 = vadd.f32 %v61_v2, %v25_v3  ;;  %v37_v11 = vadd.f32 %v61_v2, %v26_v7  ;;  %v38_v12 = vadd.f32 %v61_v2, %v27_v8  ;;  %v39_v13 = vadd.f32 %v61_v2, %v28_v9 }
   0x7   :  { %vm40_vm0 = vcmp.ge.f32.partialorder %v36_v10, 0.0  ;;  %v44_v14 = vmul.f32 0.2, %v36_v10  ;;  %vm41_vm1 = vcmp.ge.f32.partialorder %v37_v11, 0.0  ;;  %v45_v15 = vmul.f32 0.2, %v37_v11 }
   0x8   :  { %vm42_vm2 = vcmp.ge.f32.partialorder %v38_v12, 0.0  ;;  %v46_v16 = vmul.f32 0.2, %v38_v12  ;;  %vm43_vm3 = vcmp.ge.f32.partialorder %v39_v13, 0.0  ;;  %v47_v18 = vmul.f32 0.2, %v39_v13 }
   0x9   :  { %v48_v17 = vsel %vm40_vm0, %v36_v10, %v44_v14  ;;  %v49_v19 = vsel %vm41_vm1, %v37_v11, %v45_v15 }
   0xa   :  { %52 = vst [vmem:[%s115_s3] sm:$0xff] %v48_v17  ;;  %v50_v20 = vsel %vm42_vm2, %v38_v12, %v46_v16  ;;  %53 = vst [vmem:[%s115_s3 + $0x8] sm:$0xff] %v49_v19  ;;  %v51_v21 = vsel %vm43_vm3, %v39_v13, %v47_v18 }
   0xb   :  { %54 = vst [vmem:[%s115_s3 + $0x10] sm:$0xff] %v50_v20  ;;  %55 = vst [vmem:[%s115_s3 + $0x18] sm:$0xff] %v51_v21 }

// kernel: encoder_forward.11
= control target key start
LH: loop header
LB: loop body
LE: loop exit
PB: predicated region body
PF: predicated region fallthrough
CT: control target
= control target key end

     0   :  { %s723_s0 = inlined_call_operand.vmem [shape: bf16[16,512], index: 0, kind: input, shape index: {}]   ;;  %s724_s1 = inlined_call_operand.vmem [shape: bf16[512,128], index: 1, kind: input, shape index: {}]   ;;  %s725_s2 = inlined_call_operand.vmem [shape: f32[16,128], index: 2, kind: output, shape index: {0}]   ;;  %s726_s3 = inlined_call_operand.hbm [shape: f32[1,2,128], index: 3, kind: output, shape index: {1}]  }
   0x1   :  { %v514_v0 = vld [vmem:[%s724_s1 + $0x40] sm:$0xff]   ;;  %v518_v4 = vld [vmem:[%s724_s1 + $0x48] sm:$0xff]   ;;  %v522_v8 = vld [vmem:[%s724_s1 + $0x50] sm:$0xff]  }
   0x2   :  { %v515_v1 = vld [vmem:[%s724_s1 + $0xc0] sm:$0xff]   ;;  %469 = vmatprep.subr.bf16.mxu0 %v514_v0  ;;  %v519_v5 = vld [vmem:[%s724_s1 + $0xc8] sm:$0xff]   ;;  %v523_v9 = vld [vmem:[%s724_s1 + $0xd0] sm:$0xff]  }
   0x3   :  { %v516_v2 = vld [vmem:[%s724_s1] sm:$0xff]   ;;  %491 = vmatprep.subr.bf16.mxu1 %v515_v1  ;;  %v520_v6 = vld [vmem:[%s724_s1 + $0x8] sm:$0xff]   ;;  %v524_v10 = vld [vmem:[%s724_s1 + $0x10] sm:$0xff]  }
   0x4   :  { %v517_v3 = vld [vmem:[%s724_s1 + $0x80] sm:$0xff]   ;;  %470 = vmatpush3.bf16.msra.mxu0 %v516_v2  ;;  %v521_v7 = vld [vmem:[%s724_s1 + $0x88] sm:$0xff]   ;;  %v525_v11 = vld [vmem:[%s724_s1 + $0x90] sm:$0xff]  }
   0x5   :  { %492 = vmatpush3.bf16.msra.mxu1 %v517_v3  ;;  %471 = vmatprep.subr.bf16.mxu0 %v518_v4  ;;  %v526_v12 = vld [vmem:[%s724_s1 + $0x58] sm:$0xff]   ;;  %v530_v16 = vld [vmem:[%s724_s1 + $0x60] sm:$0xff]   ;;  %v534_v20 = vld [vmem:[%s724_s1 + $0x68] sm:$0xff]  }
   0x6   :  { %493 = vmatprep.subr.bf16.mxu1 %v519_v5  ;;  %v527_v13 = vld [vmem:[%s724_s1 + $0xd8] sm:$0xff]   ;;  %v531_v17 = vld [vmem:[%s724_s1 + $0xe0] sm:$0xff]   ;;  %v535_v21 = vld [vmem:[%s724_s1 + $0xe8] sm:$0xff]  }
   0x7   :  { %v528_v14 = vld [vmem:[%s724_s1 + $0x18] sm:$0xff]   ;;  %v532_v18 = vld [vmem:[%s724_s1 + $0x20] sm:$0xff]   ;;  %v536_v22 = vld [vmem:[%s724_s1 + $0x28] sm:$0xff]  }
   0x8   :  { %472 = vmatpush3.bf16.msra.mxu0 %v520_v6  ;;  %v529_v15 = vld [vmem:[%s724_s1 + $0x98] sm:$0xff]   ;;  %v533_v19 = vld [vmem:[%s724_s1 + $0xa0] sm:$0xff]   ;;  %v537_v23 = vld [vmem:[%s724_s1 + $0xa8] sm:$0xff]  }
   0x9   :  { %494 = vmatpush3.bf16.msra.mxu1 %v521_v7  ;;  %473 = vmatprep.subr.bf16.mxu0 %v522_v8  ;;  %v538_v24 = vld [vmem:[%s724_s1 + $0x70] sm:$0xff]   ;;  %v542_v28 = vld [vmem:[%s724_s1 + $0x78] sm:$0xff]  }
   0xa   :  { %495 = vmatprep.subr.bf16.mxu1 %v523_v9  ;;  %v539_v25 = vld [vmem:[%s724_s1 + $0xf0] sm:$0xff]   ;;  %v543_v29 = vld [vmem:[%s724_s1 + $0xf8] sm:$0xff]  }
   0xb   :  { %v540_v26 = vld [vmem:[%s724_s1 + $0x30] sm:$0xff]   ;;  %v544_v30 = vld [vmem:[%s724_s1 + $0x38] sm:$0xff]  }
   0xc   :  { %474 = vmatpush3.bf16.msra.mxu0 %v524_v10  ;;  %v541_v27 = vld [vmem:[%s724_s1 + $0xb0] sm:$0xff]   ;;  %v545_v31 = vld [vmem:[%s724_s1 + $0xb8] sm:$0xff]  }
   0xd   :  { %496 = vmatpush3.bf16.msra.mxu1 %v525_v11  ;;  %475 = vmatprep.subr.bf16.mxu0 %v526_v12  ;;  %v546_v32 = vld [vmem:[%s723_s0] ss:$16 sps:$4 sm:$0xff]   ;;  %v548_v33 = vld [vmem:[%s723_s0 + $0x4] ss:$16 sps:$4 sm:$0xff]   ;;  %v549_v34 = vld [vmem:[%s723_s0 + $0x8] ss:$16 sps:$4 sm:$0xff]  }
   0xe   :  { %497 = vmatprep.subr.bf16.mxu1 %v527_v13  ;;  %v551_v35 = vld [vmem:[%s723_s0 + $0xc] ss:$16 sps:$4 sm:$0xff]  }
  0x10   :  { %476 = vmatpush3.bf16.msra.mxu0 %v528_v14 }
  0x11   :  { %498 = vmatpush3.bf16.msra.mxu1 %v529_v15  ;;  %477 = vmatprep.subr.bf16.mxu0 %v530_v16 }
  0x12   :  { %499 = vmatprep.subr.bf16.mxu1 %v531_v17 }
  0x14   :  { %478 = vmatpush3.bf16.msra.mxu0 %v532_v18 }
  0x15   :  { %500 = vmatpush3.bf16.msra.mxu1 %v533_v19  ;;  %479 = vmatprep.subr.bf16.mxu0 %v534_v20 }
  0x16   :  { %501 = vmatprep.subr.bf16.mxu1 %v535_v21 }
  0x18   :  { %480 = vmatpush3.bf16.msra.mxu0 %v536_v22 }
  0x19   :  { %502 = vmatpush3.bf16.msra.mxu1 %v537_v23  ;;  %481 = vmatprep.subr.bf16.mxu0 %v538_v24 }
  0x1a   :  { %503 = vmatprep.subr.bf16.mxu1 %v539_v25 }
  0x1c   :  { %482 = vmatpush3.bf16.msra.mxu0 %v540_v26 }
  0x1d   :  { %504 = vmatpush3.bf16.msra.mxu1 %v541_v27  ;;  %483 = vmatprep.subr.bf16.mxu0 %v542_v28 }
  0x1e   :  { %505 = vmatprep.subr.bf16.mxu1 %v543_v29 }
  0x20   :  { %484 = vmatpush3.bf16.msra.mxu0 %v544_v30 }
  0x21   :  { %506 = vmatpush3.bf16.msra.mxu1 %v545_v31 }
  0x22   :  { %9 = vsyncpa [#allocation4], 0  ;;  %335 = vmatprep.mubr.bf16.mxu0 %v548_v33  ;;  %376 = vmatprep.mubr.bf16.mxu1 %v551_v35  ;;  %s576_s5 = smov [#allocation3]   ;;  %vm410_vm0 = vcmask 1040384  }
  0x23   :  { %336 = vmatmul.mubr.bf16.vlgmr.msra.gmra.mrb[0].mxu0 %v546_v32  ;;  %s423_s6 = sshll.u32 %s576_s5, 4  ;;  %s424_s6 = int_to_ptr.vmem [resolvable:$true] %s423_s6 }
  0x24   :  { %377 = vmatmul.mubr.bf16.vlgmr.msra.gmra.mrb[0].mxu1 %v549_v34  ;;  %p557_p1 = scmp.lt.s32.totalorder %s424_s6, %s424_s6 }
  0xf6   :  { %v485_v36 = vpop.f32.mrb[0].mxu0 }
  0xf7   :  { %v507_v37 = vpop.f32.mrb[0].mxu1  ;;  %v486_v38 = vpop.f32.mrb[1].mxu0 }
  0xf8   :  { %v487_v39 = vadd.f32 %v486_v38, %v485_v36  ;;  %v508_v40 = vpop.f32.mrb[1].mxu1  ;;  %v488_v41 = vpop.f32.mrb[2].mxu0 }
  0xf9   :  { %v509_v42 = vadd.f32 %v508_v40, %v507_v37  ;;  %v510_v43 = vpop.f32.mrb[2].mxu1  ;;  %v489_v44 = vpop.f32.mrb[3].mxu0 }
  0xfa   :  { %v490_v45 = vadd.f32 %v489_v44, %v488_v41  ;;  %v511_v46 = vpop.f32.mrb[3].mxu1 }
  0xfb   :  { %v379_v47 = vadd.f32 %v509_v42, %v487_v39  ;;  %v512_v48 = vadd.f32 %v511_v46, %v510_v43 }
  0xfd   :  { %413 = vst [vmem:[%s725_s2] sm:$0xff] %v379_v47  ;;  %v382_v49 = vadd.f32 %v512_v48, %v490_v45  ;;  %v401_v50 = vmul.f32 %v379_v47, %v379_v47 }
  0xff   :  { %v394_v51 = vadd.f32 %v382_v49, %v379_v47  ;;  %v402_v52 = vmul.f32 %v382_v49, %v382_v49  ;;  %414 = vst [vmem:[%s725_s2 + $0x8] sm:$0xff] %v382_v49  ;;  %s552_s2 = scalar_lea.vmem %s424_s6, 32 }
 0x100   :  { %p553_p0 = scmp.ne.s32.totalorder %s424_s6, %s552_s2  ;;  %p558_p2 = scmp.lt.s32.totalorder %s552_s2, %s552_s2 }
 0x101   :  { %v395_v53 = vrot.slane %v394_v51, 4  ;;  %v403_v54 = vadd.f32 %v402_v52, %v401_v50 }
 0x102   :  { %p559_p3 = por %p558_p2, %p557_p1 }
 0x103   :  { %v396_v55 = vadd.f32 %v395_v53, %v394_v51  ;;  %v404_v56 = vrot.slane %v403_v54, 4 }
 0x104   :  { %p560_p4 = pnand %p559_p3, %p553_p0 }
 0x105   :  { %v397_v57 = vrot.slane %v396_v55, 2  ;;  %v405_v58 = vadd.f32 %v404_v56, %v403_v54 }
 0x107   :  { %v398_v59 = vadd.f32 %v397_v57, %v396_v55  ;;  %v406_v60 = vrot.slane %v405_v58, 2 }
 0x109   :  { %v399_v61 = vrot.slane %v398_v59, 1  ;;  %v407_v62 = vadd.f32 %v406_v60, %v405_v58 }
 0x10b   :  { %v408_v63 = vrot.slane %v407_v62, 1  ;;  %v400_v0 = vadd.f32 %v399_v61, %v398_v59 }
 0x10d   :  { %v409_v1 = vadd.f32 %v408_v63, %v407_v62 }
 0x10f   :  { %v411_v2 = vsel %vm410_vm0, %v400_v0, %v409_v1 }
 0x110   :  { %412 = vst [vmem:[#allocation3] sm:$0x3] %v411_v2 }
 0x111   :  { %563 = shalt.err (!%p560_p4)
}
 0x112   :  { %s564_s9 = scalar_lea.hbm %s726_s3, 32 }
 0x113   :  { %p565_p5 = scmp.ne.s32.totalorder %s726_s3, %s564_s9  ;;  %p568_p6 = scmp.lt.u32.totalorder %s564_s9, %s726_s3 }
 0x115   :  { %p570_p7 = pnand %p568_p6, %p565_p5 }
 0x117   :  { %573 = shalt.err (!%p570_p7)
}
 0x118   :  { %426 = dma.vmem_to_hbm [thread:$0]  %s424_s6, 32, %s726_s3, [#allocation4]  }
 0x119   :  { %574 = dma.done.wait [#allocation4], 32  }
 0x11a   :  { %575 = vsyncadd [#allocation4], 4294967264 }
 0x11b   :  { %432 = vsyncpa [#allocation4], 1 }

</bundles_post_ra>
